<compile_context>
chip_gen: v5e
topology: v5e:2x2
jax: 0.10.0
libtpu: 0.0.40
codegen_flags: <defaults>
</compile_context>

<pallas_src>
import jax
import jax.numpy as jnp
from jax.experimental import pallas as pl
from jax.experimental.pallas import tpu as pltpu


def _ctx_encoder_kernel(ents_ref, xy_ref, wc_ref, wd_ref, out_ref):
    # ents_ref: (N, F, TB)    F = dim_ent + 1 (trailing ones feature)
    # xy_ref:   (2, N, TB)    xy_ref[0] = x, xy_ref[1] = y
    # wc_ref:   (N, 3*Hh, F)  fused weight (prop | pos_i(+br) | ents), biases folded
    # wd_ref:   (Hh, 1)       distance-feature weight column
    # out_ref:  (N, 2*Hh, TB)
    Hh = wd_ref.shape[0]

    ents = ents_ref[...]                                     # (N, F, TB)
    wc = wc_ref[...]                                         # (N, 3Hh, F)

    # One fused (batched) matmul: combined[n] = wc[n] @ ents[n]  -> (N, 3Hh, TB)
    combined = jnp.einsum('nhf,nfb->nhb', wc, ents,
                          preferred_element_type=jnp.float32)

    prop = jnp.maximum(combined[:, 0:Hh, :], 0.0)            # (N, Hh, TB)
    c_pos = combined[:, Hh:2 * Hh, :]                        # pos_i @ Wr[:2] + br
    a_ent = combined[:, 2 * Hh:3 * Hh, :]                    # ents  @ Wr[2:2+D]
    a_i = c_pos + a_ent                                      # i-only relation term

    x = xy_ref[0]                                            # (N, TB)
    y = xy_ref[1]
    dx = x[:, None, :] - x[None, :, :]                       # (N, N, TB)
    dy = y[:, None, :] - y[None, :, :]
    dist = jnp.sqrt(dx * dx + dy * dy)                       # (N, N, TB)

    wd = wd_ref[...]                                         # (Hh, 1)
    rel = jnp.maximum(
        a_i[:, None, :, :] - a_ent[None, :, :, :]
        + dist[:, :, None, :] * wd[None, None, :, :], 0.0)   # (N, N, Hh, TB)
    rel_sum = jnp.sum(rel, axis=1)                           # sum over j (major axis)
    # remove the j == i term (dist_ii == 0 exactly, same expression as summed)
    rel_sum = rel_sum - jnp.maximum(a_i - a_ent, 0.0)

    # Two sublane-sliced, fully lane-dense stores (no lane-axis concat).
    out_ref[:, 0:Hh, :] = prop.astype(out_ref.dtype)
    out_ref[:, Hh:, :] = rel_sum.astype(out_ref.dtype)


def _pick_batch_tiling(B, block_b):
    """Returns (block_b, grid_b); block_b is a multiple of 128 lanes."""
    if block_b is not None:
        block_b = 128 * pl.cdiv(max(int(block_b), 1), 128)
        return block_b, pl.cdiv(B, block_b)
    lanes = pl.cdiv(B, 128)                 # 128-lane groups of real data
    n_tiles = pl.cdiv(lanes, 4)             # tiles of at most 512 lanes
    if lanes >= 2:
        n_tiles = max(n_tiles, 2)           # >= 2 grid steps when possible
    if n_tiles > 1 and n_tiles % 2:
        n_tiles += 1                        # even split across v7x's two TCs
    block_b = 128 * pl.cdiv(lanes, n_tiles)
    return block_b, n_tiles


def relational_attention_ctx_encoder(ctx, wp, bp, wr, br, *,
                                     num_ent, dim_ent, block_b=None):
    """ctx: (B, num_ent*dim_ent) f32 -> (B, num_ent, 2*Hh) f32 (eval mode)."""
    B = ctx.shape[0]
    N, D = num_ent, dim_ent
    Hh = wp.shape[1]
    F = D + 1                                                # ones feature appended

    block_b, grid_b = _pick_batch_tiling(B, block_b)
    b_pad = block_b * grid_b

    # --- wrapper-side layout plumbing (plain XLA, HBM-side) ---
    ents = ctx.reshape(B, N, D)
    ents_aug = jnp.concatenate([ents, jnp.ones((B, N, 1), ctx.dtype)], axis=-1)
    if b_pad != B:
        ents_aug = jnp.pad(ents_aug, ((0, b_pad - B), (0, 0), (0, 0)))
    ents_t = jnp.transpose(ents_aug, (1, 2, 0))              # (N, F, b_pad)
    xy_t = jnp.transpose(ents_aug[:, :, :2], (2, 1, 0))      # (2, N, b_pad)

    # Fused weight, bias folded into the trailing ones feature:
    #   rows [0, Hh)    : property linear (+ bp)
    #   rows [Hh, 2Hh)  : pos_i part of relation linear (+ br)
    #   rows [2Hh, 3Hh) : ents part of relation linear
    wc = jnp.zeros((3 * Hh, F), jnp.float32)
    wc = wc.at[0:Hh, 2:D].set(wp.T)
    wc = wc.at[0:Hh, D].set(bp)
    wc = wc.at[Hh:2 * Hh, 0:2].set(wr[0:2].T)
    wc = wc.at[Hh:2 * Hh, D].set(br)
    wc = wc.at[2 * Hh:3 * Hh, 0:D].set(wr[2:2 + D].T)
    wc_b = jnp.broadcast_to(wc[None], (N, 3 * Hh, F))        # tiny (7,48,5)
    w_dist = wr[2 + D].reshape(Hh, 1)

    out_t = pl.pallas_call(
        _ctx_encoder_kernel,
        out_shape=jax.ShapeDtypeStruct((N, 2 * Hh, b_pad), jnp.float32),
        grid=(grid_b,),
        in_specs=[
            pl.BlockSpec((N, F, block_b), lambda b: (0, 0, b)),
            pl.BlockSpec((2, N, block_b), lambda b: (0, 0, b)),
            pl.BlockSpec((N, 3 * Hh, F), lambda b: (0, 0, 0)),
            pl.BlockSpec((Hh, 1), lambda b: (0, 0)),
        ],
        out_specs=pl.BlockSpec((N, 2 * Hh, block_b), lambda b: (0, 0, b)),
        compiler_params=pltpu.CompilerParams(
            dimension_semantics=("parallel",)),
    )(ents_t, xy_t, wc_b, w_dist)

    out = jnp.transpose(out_t, (2, 0, 1))                    # (b_pad, N, 2*Hh)
    return out[:B] if b_pad != B else out


def _reference(ctx, wp, bp, wr, br, *, num_ent, dim_ent):
    """Pure-JAX reference mirroring the PyTorch forward (eval mode)."""
    B = ctx.shape[0]
    N, D = num_ent, dim_ent
    ents = ctx.reshape(B, N, D)
    prop = jax.nn.relu(ents[:, :, 2:] @ wp + bp)                      # (B,N,Hh)
    diff = ents[:, :, None, :] - ents[:, None, :, :]                  # (B,N,N,D)
    dist = jnp.sqrt(diff[..., 0] ** 2 + diff[..., 1] ** 2)            # (B,N,N)
    pos_i = jnp.broadcast_to(ents[:, :, None, :2], (B, N, N, 2))
    feat = jnp.concatenate([pos_i, diff, dist[..., None]], axis=-1)   # (B,N,N,D+3)
    rel = jax.nn.relu(jnp.einsum('bijk,kh->bijh', feat, wr) + br)
    mask = (1.0 - jnp.eye(N))[None, :, :, None]
    rel_sum = jnp.sum(rel * mask, axis=2)                             # (B,N,Hh)
    return jnp.concatenate([prop, rel_sum], axis=-1)


if __name__ == "__main__":
    # Domain sizes (one-common-ground style): 7 entities, 4 features each.
    B, NUM_ENT, DIM_ENT = 2, 7, 4
    NEMBED_CTX = 32
    HH = NEMBED_CTX // 2

    key = jax.random.PRNGKey(0)
    k_ctx, k_wp, k_bp, k_wr, k_br, k_ctx2, k_ctx3 = jax.random.split(key, 7)

    ctx = jax.random.normal(k_ctx, (B, NUM_ENT * DIM_ENT), dtype=jnp.float32)
    # property_encoder: Linear(2 -> Hh)
    wp = 0.1 * jax.random.normal(k_wp, (2, HH), dtype=jnp.float32)
    bp = 0.1 * jax.random.normal(k_bp, (HH,), dtype=jnp.float32)
    # relation_encoder: Linear(2 + dim_ent + 1 -> Hh)
    wr = 0.1 * jax.random.normal(k_wr, (2 + DIM_ENT + 1, HH), dtype=jnp.float32)
    br = 0.1 * jax.random.normal(k_br, (HH,), dtype=jnp.float32)

    # --- tiny batch: single 128-lane tile, 1 grid step ---
    out = jax.block_until_ready(relational_attention_ctx_encoder(
        ctx, wp, bp, wr, br, num_ent=NUM_ENT, dim_ent=DIM_ENT))
    ref = _reference(ctx, wp, bp, wr, br, num_ent=NUM_ENT, dim_ent=DIM_ENT)
    assert out.shape == (B, NUM_ENT, NEMBED_CTX), out.shape
    err = float(jnp.max(jnp.abs(out - ref)))
    assert err < 1e-4, err

    # --- batch that needs lane padding inside one tile ---
    B2 = 37
    ctx2 = jax.random.normal(k_ctx2, (B2, NUM_ENT * DIM_ENT), dtype=jnp.float32)
    out2 = jax.block_until_ready(relational_attention_ctx_encoder(
        ctx2, wp, bp, wr, br, num_ent=NUM_ENT, dim_ent=DIM_ENT))
    ref2 = _reference(ctx2, wp, bp, wr, br, num_ent=NUM_ENT, dim_ent=DIM_ENT)
    assert out2.shape == (B2, NUM_ENT, NEMBED_CTX), out2.shape
    err2 = float(jnp.max(jnp.abs(out2 - ref2)))
    assert err2 < 1e-4, err2

    # --- batch large enough for a multi-step (megacore-splittable) grid ---
    B3 = 300
    ctx3 = jax.random.normal(k_ctx3, (B3, NUM_ENT * DIM_ENT), dtype=jnp.float32)
    out3 = jax.block_until_ready(relational_attention_ctx_encoder(
        ctx3, wp, bp, wr, br, num_ent=NUM_ENT, dim_ent=DIM_ENT))
    ref3 = _reference(ctx3, wp, bp, wr, br, num_ent=NUM_ENT, dim_ent=DIM_ENT)
    assert out3.shape == (B3, NUM_ENT, NEMBED_CTX), out3.shape
    err3 = float(jnp.max(jnp.abs(out3 - ref3)))
    assert err3 < 1e-4, err3

    print("KERNEL_OK")
</pallas_src>

<mosaic_0001>
module attributes {stable_mosaic.version = 11 : i64} {
  func.func @_ctx_encoder_kernel(%arg0: i32, %arg1: memref<7x5x128xf32, #tpu.memory_space<vmem>>, %arg2: memref<2x7x128xf32, #tpu.memory_space<vmem>>, %arg3: memref<7x48x5xf32, #tpu.memory_space<vmem>>, %arg4: memref<16x1xf32, #tpu.memory_space<vmem>>, %arg5: memref<7x32x128xf32, #tpu.memory_space<vmem>>) attributes {dimension_semantics = [#tpu.dimension_semantics<parallel>], iteration_bounds = array<i64: 1>, scalar_prefetch = 0 : i64, scratch_operands = 0 : i64, tpu.core_type = #tpu.core_type<tc>, window_params = [{transform_indices = @transform_0, window_bounds = array<i64: 7, 5, 128>}, {transform_indices = @transform_1, window_bounds = array<i64: 2, 7, 128>}, {pipeline_mode = #tpu.pipeline_mode<synchronous>, transform_indices = @transform_2, window_bounds = array<i64: 7, 48, 5>}, {pipeline_mode = #tpu.pipeline_mode<synchronous>, transform_indices = @transform_3, window_bounds = array<i64: 16, 1>}, {transform_indices = @transform_4, window_bounds = array<i64: 7, 32, 128>}]} {
    %c0 = arith.constant 0 : index
    %c0_0 = arith.constant 0 : index
    %c0_1 = arith.constant 0 : index
    %0 = vector.load %arg1[%c0, %c0_0, %c0_1] : memref<7x5x128xf32, #tpu.memory_space<vmem>>, vector<7x5x128xf32>
    %c0_2 = arith.constant 0 : index
    %c0_3 = arith.constant 0 : index
    %c0_4 = arith.constant 0 : index
    %1 = vector.load %arg3[%c0_2, %c0_3, %c0_4] : memref<7x48x5xf32, #tpu.memory_space<vmem>>, vector<7x48x5xf32>
    "tpu.trace_start"() <{level = 10 : i32, message = "nhf,nfb->nhb"}> : () -> ()
    %cst = arith.constant dense<0.000000e+00> : vector<7x48x128xf32>
    %2 = tpu.matmul %1, %0, %cst {dimension_numbers = #tpu.dot_dimension_numbers<[2], [1], [1], [2], [0, 0, 0, 1, 1, 2], [0], [0]>} : vector<7x48x5xf32>, vector<7x5x128xf32>, vector<7x48x128xf32> -> vector<7x48x128xf32>
    "tpu.trace_stop"() : () -> ()
    %3 = vector.extract_strided_slice %2 {offsets = [0, 0, 0], sizes = [7, 16, 128], strides = [1, 1, 1]} : vector<7x48x128xf32> to vector<7x16x128xf32>
    %cst_5 = arith.constant 0.000000e+00 : f32
    %4 = vector.broadcast %cst_5 : f32 to vector<7x16x128xf32>
    %5 = arith.maximumf %3, %4 : vector<7x16x128xf32>
    %6 = vector.extract_strided_slice %2 {offsets = [0, 16, 0], sizes = [7, 16, 128], strides = [1, 1, 1]} : vector<7x48x128xf32> to vector<7x16x128xf32>
    %7 = vector.extract_strided_slice %2 {offsets = [0, 32, 0], sizes = [7, 16, 128], strides = [1, 1, 1]} : vector<7x48x128xf32> to vector<7x16x128xf32>
    %8 = arith.addf %6, %7 : vector<7x16x128xf32>
    %c0_6 = arith.constant 0 : index
    %c0_7 = arith.constant 0 : index
    %c0_8 = arith.constant 0 : index
    %9 = vector.load %arg2[%c0_6, %c0_7, %c0_8] : memref<2x7x128xf32, #tpu.memory_space<vmem>>, vector<1x7x128xf32>
    %10 = vector.shape_cast %9 : vector<1x7x128xf32> to vector<7x128xf32>
    %c1 = arith.constant 1 : index
    %c0_9 = arith.constant 0 : index
    %c0_10 = arith.constant 0 : index
    %11 = vector.load %arg2[%c1, %c0_9, %c0_10] : memref<2x7x128xf32, #tpu.memory_space<vmem>>, vector<1x7x128xf32>
    %12 = vector.shape_cast %11 : vector<1x7x128xf32> to vector<7x128xf32>
    %13 = vector.shape_cast %10 : vector<7x128xf32> to vector<7x1x128xf32>
    %14 = vector.shape_cast %10 : vector<7x128xf32> to vector<1x7x128xf32>
    %15 = vector.broadcast %13 : vector<7x1x128xf32> to vector<7x7x128xf32>
    %16 = vector.broadcast %14 : vector<1x7x128xf32> to vector<7x7x128xf32>
    %17 = arith.subf %15, %16 : vector<7x7x128xf32>
    %18 = vector.shape_cast %12 : vector<7x128xf32> to vector<7x1x128xf32>
    %19 = vector.shape_cast %12 : vector<7x128xf32> to vector<1x7x128xf32>
    %20 = vector.broadcast %18 : vector<7x1x128xf32> to vector<7x7x128xf32>
    %21 = vector.broadcast %19 : vector<1x7x128xf32> to vector<7x7x128xf32>
    %22 = arith.subf %20, %21 : vector<7x7x128xf32>
    %23 = arith.mulf %17, %17 : vector<7x7x128xf32>
    %24 = arith.mulf %22, %22 : vector<7x7x128xf32>
    %25 = arith.addf %23, %24 : vector<7x7x128xf32>
    %26 = math.sqrt %25 : vector<7x7x128xf32>
    %c0_11 = arith.constant 0 : index
    %c0_12 = arith.constant 0 : index
    %27 = vector.load %arg4[%c0_11, %c0_12] : memref<16x1xf32, #tpu.memory_space<vmem>>, vector<16x1xf32>
    %28 = vector.shape_cast %8 : vector<7x16x128xf32> to vector<7x1x16x128xf32>
    %29 = vector.shape_cast %7 : vector<7x16x128xf32> to vector<1x7x16x128xf32>
    %30 = vector.broadcast %28 : vector<7x1x16x128xf32> to vector<7x7x16x128xf32>
    %31 = vector.broadcast %29 : vector<1x7x16x128xf32> to vector<7x7x16x128xf32>
    %32 = arith.subf %30, %31 : vector<7x7x16x128xf32>
    %33 = vector.shape_cast %26 : vector<7x7x128xf32> to vector<7x7x1x128xf32>
    %34 = vector.shape_cast %27 : vector<16x1xf32> to vector<1x1x16x1xf32>
    %35 = vector.broadcast %33 : vector<7x7x1x128xf32> to vector<7x7x16x128xf32>
    %36 = vector.broadcast %34 : vector<1x1x16x1xf32> to vector<7x7x16x128xf32>
    %37 = arith.mulf %35, %36 : vector<7x7x16x128xf32>
    %38 = arith.addf %32, %37 : vector<7x7x16x128xf32>
    %cst_13 = arith.constant 0.000000e+00 : f32
    %39 = vector.broadcast %cst_13 : f32 to vector<7x7x16x128xf32>
    %40 = arith.maximumf %38, %39 : vector<7x7x16x128xf32>
    %cst_14 = arith.constant dense<0.000000e+00> : vector<7x16x128xf32>
    %41 = vector.multi_reduction <add>, %40, %cst_14 [1] : vector<7x7x16x128xf32> to vector<7x16x128xf32>
    %42 = arith.subf %8, %7 : vector<7x16x128xf32>
    %cst_15 = arith.constant 0.000000e+00 : f32
    %43 = vector.broadcast %cst_15 : f32 to vector<7x16x128xf32>
    %44 = arith.maximumf %42, %43 : vector<7x16x128xf32>
    %45 = arith.subf %41, %44 : vector<7x16x128xf32>
    %c0_16 = arith.constant 0 : index
    %c0_17 = arith.constant 0 : index
    %c0_18 = arith.constant 0 : index
    %46 = vector.load %arg5[%c0_16, %c0_17, %c0_18] : memref<7x32x128xf32, #tpu.memory_space<vmem>>, vector<7x16x128xf32>
    tpu.vector_store %arg5[%c0_16, %c0_17, %c0_18], %5 {strides = array<i32>} : memref<7x32x128xf32, #tpu.memory_space<vmem>>, vector<7x16x128xf32>,
    %c0_19 = arith.constant 0 : index
    %c16 = arith.constant 16 : index
    %c0_20 = arith.constant 0 : index
    %47 = vector.load %arg5[%c0_19, %c16, %c0_20] : memref<7x32x128xf32, #tpu.memory_space<vmem>>, vector<7x16x128xf32>
    tpu.vector_store %arg5[%c0_19, %c16, %c0_20], %45 {strides = array<i32>} : memref<7x32x128xf32, #tpu.memory_space<vmem>>, vector<7x16x128xf32>,
    return
  }
  func.func @transform_0(%arg0: i32) -> (i32, i32, i32) {
    %c0_i32 = arith.constant 0 : i32
    %c0_i32_0 = arith.constant 0 : i32
    %c0_i32_1 = arith.constant 0 : i32
    return %c0_i32, %c0_i32_0, %arg0 : i32, i32, i32
  }
  func.func @transform_1(%arg0: i32) -> (i32, i32, i32) {
    %c0_i32 = arith.constant 0 : i32
    %c0_i32_0 = arith.constant 0 : i32
    %c0_i32_1 = arith.constant 0 : i32
    return %c0_i32, %c0_i32_0, %arg0 : i32, i32, i32
  }
  func.func @transform_2(%arg0: i32) -> (i32, i32, i32) {
    %c0_i32 = arith.constant 0 : i32
    %c0_i32_0 = arith.constant 0 : i32
    %c0_i32_1 = arith.constant 0 : i32
    %c0_i32_2 = arith.constant 0 : i32
    return %c0_i32, %c0_i32_0, %c0_i32_1 : i32, i32, i32
  }
  func.func @transform_3(%arg0: i32) -> (i32, i32) {
    %c0_i32 = arith.constant 0 : i32
    %c0_i32_0 = arith.constant 0 : i32
    %c0_i32_1 = arith.constant 0 : i32
    return %c0_i32, %c0_i32_0 : i32, i32
  }
  func.func @transform_4(%arg0: i32) -> (i32, i32, i32) {
    %c0_i32 = arith.constant 0 : i32
    %c0_i32_0 = arith.constant 0 : i32
    %c0_i32_1 = arith.constant 0 : i32
    return %c0_i32, %c0_i32_0, %arg0 : i32, i32, i32
  }
}

</mosaic_0001>

<bundles_post_ra>
// kernel: tpu_custom_call.1
= control target key start
LH: loop header
LB: loop body
LE: loop exit
PB: predicated region body
PF: predicated region fallthrough
CT: control target
= control target key end

     0   :  { %vm86_vm0 = vcmask 1044480   ;;  %vm67_vm1 = vcmask 39936   ;;  %v1462_v10 = vmov 0   ;;  %s2965_s0 = inlined_call_operand.vmem [shape: f32[7,5,128], index: 0, kind: input, shape index: {}]   ;;  %s2966_s1 = inlined_call_operand.vmem [shape: f32[2,7,128], index: 1, kind: input, shape index: {}]   ;;  %s2967_s2 = inlined_call_operand.vmem [shape: f32[7,48,5], index: 2, kind: input, shape index: {}]   ;;  %s2968_s3 = inlined_call_operand.vmem [shape: f32[16,1], index: 3, kind: input, shape index: {}]   ;;  %s2969_s4 = inlined_call_operand.hbm [shape: f32[7,32,128], index: 4, kind: output, shape index: {}]  }
   0x1   :  { %v18_v0 = vld [vmem:[%s2965_s0] sm:$0x1f]  ;;  %v19_v1 = vld [vmem:[%s2965_s0 + $0x8] sm:$0x1f]  ;;  %v20_v3 = vld [vmem:[%s2965_s0 + $0x10] sm:$0x1f]  ;;  %1419 = vset.pattern.permute.xlu0 %v1462_v10 }
   0x2   :  { %v25_v2 = vld [vmem:[%s2967_s2] sm:$0xff]  ;;  %1362 = vmatpush.msk.msra.mxu0 %vm86_vm0, %v18_v0  ;;  %1412 = vmatpush.msk.msra.mxu3 %vm86_vm0, %v18_v0  ;;  %v26_v4 = vld [vmem:[%s2967_s2 + $0x8] sm:$0xff]  ;;  %v32_v5 = vld [vmem:[%s2967_s2 + $0x38] sm:$0xff] }
   0x3   :  { %1413 = vmatpush.msk.msra.mxu1 %vm86_vm0, %v19_v1  ;;  %1414 = vmatpush.msk.msra.mxu2 %vm86_vm0, %v20_v3  ;;  %v38_v6 = vld [vmem:[%s2967_s2 + $0x68] sm:$0xff]  ;;  %v21_v7 = vld [vmem:[%s2965_s0 + $0x18] sm:$0x1f]  ;;  %v24_v8 = vld [vmem:[%s2965_s0 + $0x30] sm:$0x1f] }
   0x4   :  { %1363 = vmatmul.msk.f32.vlgmr.msra.gmra.mxu0 %vm67_vm1, %v25_v2  ;;  %1364 = vmatmul.msk.f32.vlgmr.msra.gmra.mxu3 %vm67_vm1, %v26_v4  ;;  %v23_v9 = vld [vmem:[%s2965_s0 + $0x28] sm:$0x1f]  ;;  %v27_v11 = vld [vmem:[%s2967_s2 + $0x10] sm:$0xff]  ;;  %v33_v13 = vld [vmem:[%s2967_s2 + $0x40] sm:$0xff] }
   0x5   :  { %1371 = vmatmul.msk.f32.vlgmr.msra.gmra.mxu1 %vm67_vm1, %v32_v5  ;;  %1378 = vmatmul.msk.f32.vlgmr.msra.gmra.mxu2 %vm67_vm1, %v38_v6  ;;  %v31_v12 = vld [vmem:[%s2967_s2 + $0x30] sm:$0xff]  ;;  %v653_v15 = vld [vmem:[%s2968_s3] sm:$0xff] }
   0x6   :  { %1383 = vmatpush.msk.msrb.mxu3 %vm86_vm0, %v21_v7  ;;  %1404 = vmatpush.msk.msrb.mxu2 %vm86_vm0, %v24_v8  ;;  %v39_v14 = vld [vmem:[%s2967_s2 + $0x70] sm:$0xff] }
   0x7   :  { %1397 = vmatpush.msk.msrb.mxu1 %vm86_vm0, %v23_v9  ;;  %1369 = vmatpush.msk.msrb.mxu0 %vm86_vm0, %v19_v1 }
   0x9   :  { %1376 = vmatpush.msk.msra.mxu0 %vm86_vm0, %v20_v3 }
   0xa   :  { %9 = vsyncpa [#allocation3], 0  ;;  %v22_v16 = vld [vmem:[%s2965_s0 + $0x20] sm:$0x1f]  ;;  %902 = vperm.xlu0 %1419, %v653_v15   ;;  %v654_v17 = vld [vmem:[%s2968_s3 + $0x8] sm:$0xff]  ;;  %s1350_s17 = sshll.u32 %s2969_s4, 4  ;;  %s1351_s17 = int_to_ptr.hbm [resolvable:$true] %s1350_s17 }
   0xb   :  { %v28_v18 = vld [vmem:[%s2967_s2 + $0x18] sm:$0xff]  ;;  %v37_v19 = vld [vmem:[%s2967_s2 + $0x60] sm:$0xff]  ;;  %v34_v20 = vld [vmem:[%s2967_s2 + $0x48] sm:$0xff]  ;;  %s1464_s18 = smov 128   ;;  %s1465_s19 = smov 8  }
   0xc   :  { %1365 = vmatmul.msk.f32.gmra.mxu3 %vm67_vm1, %v27_v11  ;;  %1370 = vmatmul.msk.f32.vlgmr.msrb.gmra.mxu0 %vm67_vm1, %v31_v12  ;;  %v40_v21 = vld [vmem:[%s2967_s2 + $0x78] sm:$0xff]  ;;  %v29_v22 = vld [vmem:[%s2967_s2 + $0x20] sm:$0xff]  ;;  %v35_v24 = vld [vmem:[%s2967_s2 + $0x50] sm:$0xff] }
   0xd   :  { %1372 = vmatmul.msk.f32.gmra.mxu1 %vm67_vm1, %v33_v13  ;;  %1379 = vmatmul.msk.f32.gmra.mxu2 %vm67_vm1, %v39_v14  ;;  %v49_v23 = vld [vmem:[%s2967_s2 + $0xc0] sm:$0xff]  ;;  %v30_v26 = vld [vmem:[%s2967_s2 + $0x28] sm:$0xff]  ;;  %v36_v28 = vld [vmem:[%s2967_s2 + $0x58] sm:$0xff] }
   0xe   :  { %1390 = vmatpush.msk.msrb.mxu0 %vm86_vm0, %v22_v16  ;;  %v41_v25 = vld [vmem:[%s2967_s2 + $0x80] sm:$0xff]  ;;  %v50_v27 = vld [vmem:[%s2967_s2 + $0xc8] sm:$0xff]  ;;  %v43_v30 = vld [vmem:[%s2967_s2 + $0x90] sm:$0xff] }
   0xf   :  { %v42_v29 = vld [vmem:[%s2967_s2 + $0x88] sm:$0xff]  ;;  %v51_v31 = vld [vmem:[%s2967_s2 + $0xd0] sm:$0xff]  ;;  %v61_v33 = vld [vmem:[%s2967_s2 + $0x120] sm:$0xff] }
  0x10   :  { %v55_v32 = vld [vmem:[%s2967_s2 + $0xf0] sm:$0xff]  ;;  %v44_v34 = vld [vmem:[%s2967_s2 + $0x98] sm:$0xff]  ;;  %v62_v37 = vld [vmem:[%s2967_s2 + $0x128] sm:$0xff] }
  0x11   :  { %v52_v35 = vld [vmem:[%s2967_s2 + $0xd8] sm:$0xff]  ;;  %v45_v38 = vld [vmem:[%s2967_s2 + $0xa0] sm:$0xff]  ;;  %v63_v41 = vld [vmem:[%s2967_s2 + $0x130] sm:$0xff] }
  0x12   :  { %907 = vperm.xlu0 %1419, %v654_v17   ;;  %v56_v36 = vld [vmem:[%s2967_s2 + $0xf8] sm:$0xff]  ;;  %v53_v39 = vld [vmem:[%s2967_s2 + $0xe0] sm:$0xff]  ;;  %v46_v42 = vld [vmem:[%s2967_s2 + $0xa8] sm:$0xff] }
  0x13   :  { %v57_v40 = vld [vmem:[%s2967_s2 + $0x100] sm:$0xff]  ;;  %v54_v43 = vld [vmem:[%s2967_s2 + $0xe8] sm:$0xff]  ;;  %v64_v45 = vld [vmem:[%s2967_s2 + $0x138] sm:$0xff] }
  0x14   :  { %1366 = vmatmul.msk.f32.gmra.mxu3 %vm67_vm1, %v28_v18  ;;  %1377 = vmatmul.msk.f32.vlgmr.msra.gmra.mxu0 %vm67_vm1, %v37_v19  ;;  %v58_v44 = vld [vmem:[%s2967_s2 + $0x108] sm:$0xff]  ;;  %v47_v46 = vld [vmem:[%s2967_s2 + $0xb0] sm:$0xff]  ;;  %v65_v48 = vld [vmem:[%s2967_s2 + $0x140] sm:$0xff] }
  0x15   :  { %1373 = vmatmul.msk.f32.gmra.mxu1 %vm67_vm1, %v34_v20  ;;  %1380 = vmatmul.msk.f32.gmra.mxu2 %vm67_vm1, %v40_v21  ;;  %v59_v47 = vld [vmem:[%s2967_s2 + $0x110] sm:$0xff]  ;;  %v48_v49 = vld [vmem:[%s2967_s2 + $0xb8] sm:$0xff]  ;;  %v66_v51 = vld [vmem:[%s2967_s2 + $0x148] sm:$0xff] }
  0x16   :  { %v60_v50 = vld [vmem:[%s2967_s2 + $0x118] sm:$0xff]  ;;  %v1699_v52 = vld [vmem:[%s2966_s1] sm:$0x7f]  ;;  %v1704_v53 = vld [vmem:[%s2966_s1 + $0x8] sm:$0x7f] }
  0x17   :  { %v493_v54 = vrot.slane %v1699_v52, 1  ;;  %v521_v55 = vrot.slane %v1704_v53, 1  ;;  %v494_v60 = vrot.slane %v1699_v52, 2  ;;  %v522_v61 = vrot.slane %v1704_v53, 2 }
  0x18   :  { %v499_v62 = vperm.slane %v1699_v52, 0  ;;  %v527_v63 = vperm.slane %v1704_v53, 0 }
  0x19   :  { %v500_v56 = vperm.slane %v493_v54, 0  ;;  %v528_v57 = vperm.slane %v521_v55, 0  ;;  %v501_v0 = vperm.slane %v494_v60, 0  ;;  %v529_v2 = vperm.slane %v522_v61, 0 }
  0x1a   :  { %v513_v3 = vsub.f32 %v499_v62, %v1699_v52  ;;  %v541_v4 = vsub.f32 %v527_v63, %v1704_v53 }
  0x1b   :  { %v514_v58 = vsub.f32 %v500_v56, %v1699_v52  ;;  %v542_v59 = vsub.f32 %v528_v57, %v1704_v53  ;;  %v515_v6 = vsub.f32 %v501_v0, %v1699_v52  ;;  %v543_v7 = vsub.f32 %v529_v2, %v1704_v53 }
  0x1c   :  { %1367 = vmatmul.msk.f32.gmra.mxu3 %vm67_vm1, %v29_v22  ;;  %1391 = vmatmul.msk.f32.vlgmr.msrb.gmra.mxu0 %vm67_vm1, %v49_v23  ;;  %v548_v8 = vmul.f32 %v513_v3, %v513_v3  ;;  %v555_v9 = vmul.f32 %v541_v4, %v541_v4  ;;  %v497_v0 = vrot.slane %v1699_v52, 5  ;;  %v525_v3 = vrot.slane %v1704_v53, 5 }
  0x1d   :  { %1374 = vmatmul.msk.f32.gmra.mxu1 %vm67_vm1, %v35_v24  ;;  %1381 = vmatmul.msk.f32.gmra.mxu2 %vm67_vm1, %v41_v25  ;;  %v549_v1 = vmul.f32 %v514_v58, %v514_v58  ;;  %v556_v5 = vmul.f32 %v542_v59, %v542_v59  ;;  %v550_v10 = vmul.f32 %v515_v6, %v515_v6 }
  0x1e   :  { %v557_v11 = vmul.f32 %v543_v7, %v543_v7  ;;  %v1720_v13 = vadd.f32 %v555_v9, %v548_v8 }
  0x1f   :  { %v1718_v12 = vadd.f32 %v556_v5, %v549_v1 }
  0x20   :  { %v1722_v14 = vadd.f32 %v557_v11, %v550_v10  ;;  %vm576_vm2 = vcmp.eq.f32.partialorder %v1720_v13, inf  ;;  %v579_v60 = vand.u32 2147483648, %v1720_v13  ;;  %vm578_vm6 = vcmp.eq.f32.partialorder %v1720_v13, 0.0 }
  0x21   :  { %1420 = vrsqrt.f32 %v1718_v12  ;;  %vm588_vm3 = vcmp.eq.f32.partialorder %v1718_v12, inf  ;;  %v591_v57 = vand.u32 2147483648, %v1718_v12  ;;  %vm590_vm5 = vcmp.eq.f32.partialorder %v1718_v12, 0.0 }
  0x22   :  { %1422 = vrsqrt.f32 %v1720_v13  ;;  %vm600_vm4 = vcmp.eq.f32.partialorder %v1722_v14, inf  ;;  %v603_v63 = vand.u32 2147483648, %v1722_v14  ;;  %vm602_vm7 = vcmp.eq.f32.partialorder %v1722_v14, 0.0 }
  0x23   :  { %1424 = vrsqrt.f32 %v1722_v14  ;;  %v504_v10 = vperm.slane %v497_v0, 0  ;;  %v532_v11 = vperm.slane %v525_v3, 0 }
  0x24   :  { %1368 = vmatmul.msk.f32.gmra.mxu3 %vm67_vm1, %v30_v26  ;;  %1392 = vmatmul.msk.f32.gmra.mxu0 %vm67_vm1, %v50_v27 }
  0x25   :  { %1375 = vmatmul.msk.f32.gmra.mxu1 %vm67_vm1, %v36_v28  ;;  %1382 = vmatmul.msk.f32.gmra.mxu2 %vm67_vm1, %v42_v29  ;;  %v496_v28 = vrot.slane %v1699_v52, 4 }
  0x27   :  { %v1421_v15 = vpop.eup %1420 }
  0x28   :  { %v1423_v16 = vpop.eup %1422  ;;  %v582_v19 = vmul.f32 %v1421_v15, %v1718_v12 }
  0x29   :  { %v1425_v17 = vpop.eup %1424  ;;  %v570_v18 = vmul.f32 %v1423_v16, %v1720_v13 }
  0x2a   :  { %v594_v20 = vmul.f32 %v1425_v17, %v1722_v14  ;;  %v583_v22 = vmul.f32 %v1421_v15, %v582_v19 }
  0x2b   :  { %v571_v21 = vmul.f32 %v1423_v16, %v570_v18 }
  0x2c   :  { %1384 = vmatmul.msk.f32.vlgmr.msrb.gmra.mxu3 %vm67_vm1, %v43_v30  ;;  %1393 = vmatmul.msk.f32.gmra.mxu0 %vm67_vm1, %v51_v31  ;;  %v595_v23 = vmul.f32 %v1425_v17, %v594_v20  ;;  %v584_v25 = vmul.f32 0.5, %v583_v22  ;;  %v518_v22 = vsub.f32 %v504_v10, %v1699_v52 }
  0x2d   :  { %1398 = vmatmul.msk.f32.vlgmr.msrb.gmra.mxu1 %vm67_vm1, %v55_v32  ;;  %1405 = vmatmul.msk.f32.vlgmr.msrb.gmra.mxu2 %vm67_vm1, %v61_v33  ;;  %v572_v24 = vmul.f32 0.5, %v571_v21 }
  0x2e   :  { %v596_v26 = vmul.f32 0.5, %v595_v23  ;;  %v585_v32 = vsub.f32 1.5, %v584_v25  ;;  %v546_v23 = vsub.f32 %v532_v11, %v1704_v53 }
  0x2f   :  { %v573_v31 = vsub.f32 1.5, %v572_v24 }
  0x34   :  { %1385 = vmatmul.msk.f32.gmra.mxu3 %vm67_vm1, %v44_v34  ;;  %1394 = vmatmul.msk.f32.gmra.mxu0 %vm67_vm1, %v52_v35  ;;  %v597_v34 = vsub.f32 1.5, %v596_v26  ;;  %v503_v35 = vperm.slane %v496_v28, 0 }
  0x35   :  { %1399 = vmatmul.msk.f32.gmra.mxu1 %vm67_vm1, %v56_v36  ;;  %1406 = vmatmul.msk.f32.gmra.mxu2 %vm67_vm1, %v62_v37  ;;  %v524_v36 = vrot.slane %v1704_v53, 4  ;;  %v574_v37 = vmul.f32 %v1423_v16, %v573_v31 }
  0x3c   :  { %1386 = vmatmul.msk.f32.gmra.mxu3 %vm67_vm1, %v45_v38  ;;  %1395 = vmatmul.msk.f32.gmra.mxu0 %vm67_vm1, %v53_v39  ;;  %v586_v38 = vmul.f32 %v1421_v15, %v585_v32  ;;  %v495_v32 = vrot.slane %v1699_v52, 3 }
  0x3d   :  { %1400 = vmatmul.msk.f32.gmra.mxu1 %vm67_vm1, %v57_v40  ;;  %1407 = vmatmul.msk.f32.gmra.mxu2 %vm67_vm1, %v63_v41  ;;  %v517_v40 = vsub.f32 %v503_v35, %v1699_v52  ;;  %v531_v41 = vperm.slane %v524_v36, 0 }
  0x3e   :  { %v587_v54 = vmul.f32 %v586_v38, %v1718_v12 }
  0x40   :  { %v589_v61 = vsel %vm588_vm3, %v1718_v12, %v587_v54 }
  0x41   :  { %v1760_v5 = vsel %vm590_vm5, %v591_v57, %v589_v61 }
  0x42   :  { %3065 = vst [vmem:[#allocation5_spill] sm:$0xff] %v1760_v5  ;;  %v809_v26 = vperm.slane %v1760_v5, 0 }
  0x44   :  { %1387 = vmatmul.msk.f32.gmra.mxu3 %vm67_vm1, %v46_v42  ;;  %1396 = vmatmul.msk.f32.gmra.mxu0 %vm67_vm1, %v54_v43 }
  0x45   :  { %1401 = vmatmul.msk.f32.gmra.mxu1 %vm67_vm1, %v58_v44  ;;  %1408 = vmatmul.msk.f32.gmra.mxu2 %vm67_vm1, %v64_v45  ;;  %v598_v44 = vmul.f32 %v1425_v17, %v597_v34  ;;  %v767_v17 = vrot.slane %v1760_v5, 2 }
  0x47   :  { %v599_v56 = vmul.f32 %v598_v44, %v1722_v14  ;;  %v811_v35 = vperm.slane %v767_v17, 0  ;;  %v523_v44 = vrot.slane %v1704_v53, 3 }
  0x49   :  { %v601_v2 = vsel %vm600_vm4, %v1722_v14, %v599_v56 }
  0x4a   :  { %v1766_v9 = vsel %vm602_vm7, %v603_v63, %v601_v2 }
  0x4b   :  { %3067 = vst [vmem:[#allocation7_spill] sm:$0xff] %v1766_v9  ;;  %v772_v18 = vrot.slane %v1766_v9, 1  ;;  %v773_v21 = vrot.slane %v1766_v9, 2  ;;  %v2970_v36 = vperm.slane %v1766_v9, 0 }
  0x4c   :  { %1388 = vmatmul.msk.f32.gmra.mxu3 %vm67_vm1, %v47_v46 }
  0x4d   :  { %1402 = vmatmul.msk.f32.gmra.mxu1 %vm67_vm1, %v59_v47  ;;  %1409 = vmatmul.msk.f32.gmra.mxu2 %vm67_vm1, %v65_v48  ;;  %v545_v47 = vsub.f32 %v531_v41, %v1704_v53  ;;  %v552_v48 = vmul.f32 %v517_v40, %v517_v40  ;;  %v818_v38 = vperm.slane %v773_v21, 0  ;;  %v560_v40 = vmul.f32 %v546_v23, %v546_v23 }
  0x4f   :  { %v559_v55 = vmul.f32 %v545_v47, %v545_v47 }
  0x51   :  { %v1743_v58 = vadd.f32 %v559_v55, %v552_v48  ;;  %v502_v48 = vperm.slane %v495_v32, 0 }
  0x53   :  { %1426 = vrsqrt.f32 %v1743_v58  ;;  %vm624_vm8 = vcmp.eq.f32.partialorder %v1743_v58, inf  ;;  %vm626_vm9 = vcmp.eq.f32.partialorder %v1743_v58, 0.0 }
  0x54   :  { %1389 = vmatmul.msk.f32.gmra.mxu3 %vm67_vm1, %v48_v49 }
  0x55   :  { %1403 = vmatmul.msk.f32.gmra.mxu1 %vm67_vm1, %v60_v50  ;;  %1410 = vmatmul.msk.f32.gmra.mxu2 %vm67_vm1, %v66_v51  ;;  %v575_v51 = vmul.f32 %v574_v37, %v1720_v13  ;;  %v1797_v37 = vperm.slane %v772_v18, 0 }
  0x57   :  { %v577_v59 = vsel %vm576_vm2, %v1720_v13, %v575_v51  ;;  %v766_v13 = vrot.slane %v1760_v5, 1  ;;  %3069 = vst [vmem:[#allocation9_spill] sm:$0xff] %v1797_v37 }
  0x58   :  { %v1764_v8 = vsel %vm578_vm6, %v579_v60, %v577_v59 }
  0x59   :  { %3066 = vst [vmem:[#allocation6_spill] sm:$0xff] %v1764_v8  ;;  %v1771_v14 = vpop.eup %1426  ;;  %v760_v15 = vrot.slane %v1764_v8, 1  ;;  %v761_v16 = vrot.slane %v1764_v8, 2  ;;  %v802_v25 = vperm.slane %v1764_v8, 0 }
  0x5a   :  { %v618_v19 = vmul.f32 %v1771_v14, %v1743_v58 }
  0x5c   :  { %v619_v31 = vmul.f32 %v1771_v14, %v618_v19 }
  0x5e   :  { %v620_v47 = vmul.f32 0.5, %v619_v31 }
  0x60   :  { %v621_v11 = vsub.f32 1.5, %v620_v47 }
  0x7c   :  { %v1768_v12 = vpop.permute.xlu0 %902 }
  0x7d   :  { %3068 = vst [vmem:[#allocation8_spill] sm:$0xff] %v1768_v12  ;;  %v910_v41 = vmul.f32 %v1768_v12, %v802_v25  ;;  %v928_v51 = vmul.f32 %v1768_v12, %v811_v35  ;;  %v938_v54 = vmul.f32 %v1768_v12, %v2970_v36  ;;  %v940_v55 = vmul.f32 %v1768_v12, %v1797_v37 }
  0x7e   :  { %v942_v59 = vmul.f32 %v1768_v12, %v818_v38 }
  0x81   :  { %v107_v27 = vpop.f32.mrf.mxu0 }
  0x82   :  { %v461_v29 = vmax.f32 %v107_v27, 0.0  ;;  %v166_v30 = vpop.f32.mrf.mxu1  ;;  %v1788_v27 = vperm.slane %v766_v13, 0  ;;  %v763_v13 = vrot.slane %v1764_v8, 4 }
  0x83   :  { %v464_v33 = vmax.f32 %v166_v30, 0.0  ;;  %v804_v30 = vperm.slane %v761_v16, 0 }
  0x84   :  { %1316 = vst [vmem:[#allocation2] sm:$0xff] %v461_v29  ;;  %v1790_v29 = vperm.slane %v760_v15, 0  ;;  %v1819_v56 = vpop.permute.xlu0 %907  ;;  %v1880_v31 = vperm.slane %v763_v13, 0 }
  0x85   :  { %1319 = vst [vmem:[#allocation2 + $0x28] sm:$0xff] %v464_v33  ;;  %v1825_v60 = vmul.f32 %v1819_v56, %v802_v25  ;;  %v1839_v2 = vmul.f32 %v1819_v56, %v804_v30  ;;  %v1842_v3 = vmul.f32 %v1819_v56, %v811_v35  ;;  %v1859_v18 = vmul.f32 %v1819_v56, %v818_v38 }
  0x86   :  { %3071 = vst [vmem:[#allocation11_spill] sm:$0xff] %v1819_v56  ;;  %v775_v25 = vrot.slane %v1766_v9, 4 }
  0x87   :  { %v110_v39 = vpop.f32.mrf.mxu3 }
  0x88   :  { %v462_v42 = vmax.f32 %v110_v39, 0.0  ;;  %v222_v43 = vpop.f32.mrf.mxu2  ;;  %v553_v39 = vmul.f32 %v518_v22, %v518_v22 }
  0x89   :  { %v466_v45 = vmax.f32 %v222_v43, 0.0  ;;  %v163_v46 = vpop.f32.mrf.mxu0  ;;  %v926_v43 = vmul.f32 %v1768_v12, %v1788_v27 }
  0x8a   :  { %1317 = vst [vmem:[#allocation2 + $0x8] sm:$0xff] %v462_v42  ;;  %v463_v49 = vmax.f32 %v163_v46, 0.0  ;;  %v1734_v50 = vpop.f32.mrf.mxu1  ;;  %v924_v42 = vmul.f32 %v1768_v12, %v809_v26  ;;  %v1807_v46 = vmul.f32 %v1768_v12, %v804_v30  ;;  %v1830_v61 = vadd.f32 %v560_v40, %v553_v39 }
  0x8b   :  { %1321 = vst [vmem:[#allocation2 + $0x48] sm:$0xff] %v466_v45  ;;  %v912_v45 = vmul.f32 %v1768_v12, %v1790_v29  ;;  %v622_v30 = vmul.f32 %v1771_v14, %v621_v11 }
  0x8c   :  { %1318 = vst [vmem:[#allocation2 + $0x20] sm:$0xff] %v463_v49  ;;  %1428 = vrsqrt.f32 %v1830_v61  ;;  %vm636_vm10 = vcmp.eq.f32.partialorder %v1830_v61, inf  ;;  %vm638_vm11 = vcmp.eq.f32.partialorder %v1830_v61, 0.0 }
  0x8f   :  { %v1749_v62 = vpop.f32.mrf.mxu3 }
  0x90   :  { %v1755_v1 = vpop.f32.mrf.mxu2 }
  0x91   :  { %v219_v4 = vpop.f32.mrf.mxu0 }
  0x92   :  { %v1762_v6 = vpop.f32.mrf.mxu1  ;;  %v465_v7 = vmax.f32 %v219_v4, 0.0  ;;  %v530_v4 = vperm.slane %v523_v44, 0 }
  0x94   :  { %1320 = vst [vmem:[#allocation2 + $0x40] sm:$0xff] %v465_v7 }
  0x97   :  { %v1779_v20 = vpop.f32.mrf.mxu3 }
  0x98   :  { %v1784_v24 = vpop.f32.mrf.mxu2 }
  0x99   :  { %v331_v28 = vpop.f32.mrf.mxu0 }
  0x9a   :  { %v1794_v33 = vpop.f32.mrf.mxu1  ;;  %v469_v34 = vmax.f32 %v331_v28, 0.0 }
  0x9b   :  { %v1811_v49 = vadd.f32 %v1794_v33, %v1734_v50  ;;  %v1828_v50 = vmul.f32 %v1819_v56, %v809_v26  ;;  %v544_v26 = vsub.f32 %v530_v4, %v1704_v53 }
  0x9c   :  { %1324 = vst [vmem:[#allocation2 + $0x80] sm:$0xff] %v469_v34 }
  0x9d   :  { %3070 = vst [vmem:[#allocation10_spill] sm:$0xff] %v1811_v49  ;;  %v1852_v15 = vsub.f32 %v1811_v49, %v1794_v33  ;;  %v1902_v13 = vmul.f32 %v544_v26, %v544_v26 }
  0x9f   :  { %v1821_v57 = vpop.f32.mrf.mxu3  ;;  %3075 = vst [vmem:[#allocation15_spill] sm:$0xff] %v1852_v15  ;;  %v1024_v44 = vadd.f32 %v926_v43, %v1852_v15 }
  0xa0   :  { %v1834_v63 = vadd.f32 %v1821_v57, %v1749_v62  ;;  %v1836_v0 = vpop.f32.mrf.mxu2  ;;  %v516_v62 = vsub.f32 %v502_v48, %v1699_v52  ;;  %v669_v16 = vsub.f32 %v1811_v49, %v1821_v57 }
  0xa1   :  { %3073 = vst [vmem:[#allocation13_spill] sm:$0xff] %v1836_v0  ;;  %v1846_v7 = vadd.f32 %v1836_v0, %v1755_v1  ;;  %v334_v10 = vpop.f32.mrf.mxu0  ;;  %v769_v1 = vrot.slane %v1760_v5, 4  ;;  %v673_v28 = vsub.f32 %v1811_v49, %v1836_v0 }
  0xa2   :  { %3072 = vst [vmem:[#allocation12_spill] sm:$0xff] %v1834_v63  ;;  %v1856_v17 = vpop.f32.mrf.mxu1  ;;  %v1864_v19 = vsub.f32 %v1834_v63, %v1821_v57  ;;  %v657_v52 = vsub.f32 %v1834_v63, %v1794_v33  ;;  %v1882_v32 = vmul.f32 %v516_v62, %v516_v62  ;;  %v1022_v35 = vadd.f32 %v924_v42, %v669_v16 }
  0xa3   :  { %3074 = vst [vmem:[#allocation14_spill] sm:$0xff] %v1846_v7  ;;  %v683_v22 = vsub.f32 %v1846_v7, %v1821_v57  ;;  %v685_v23 = vsub.f32 %v1846_v7, %v1794_v33  ;;  %v659_v38 = vsub.f32 %v1834_v63, %v1836_v0  ;;  %v1887_v39 = vperm.slane %v769_v1, 0 }
  0xa4   :  { %3076 = vst [vmem:[#allocation16_spill] sm:$0xff] %v1864_v19  ;;  %v1008_v53 = vadd.f32 %v910_v41, %v1864_v19  ;;  %v1010_v40 = vadd.f32 %v912_v45, %v657_v52  ;;  %v1893_v14 = vsub.f32 %v1846_v7, %v1836_v0  ;;  %v1900_v42 = vperm.slane %v775_v25, 0  ;;  %v1904_v41 = vpop.eup %1428 }
  0xa5   :  { %v1036_v48 = vadd.f32 %v938_v54, %v683_v22  ;;  %v1038_v4 = vadd.f32 %v940_v55, %v685_v23  ;;  %v1026_v45 = vadd.f32 %v928_v51, %v673_v28  ;;  %v470_v43 = vmax.f32 %v334_v10, 0.0 }
  0xa6   :  { %3077 = vst [vmem:[#allocation17_spill] sm:$0xff] %v1893_v14  ;;  %v623_v16 = vmul.f32 %v622_v30, %v1743_v58  ;;  %v1911_v54 = vmul.f32 %v1768_v12, %v1880_v31  ;;  %v1120_v55 = vmax.f32 %v1022_v35, 0.0  ;;  %v1012_v1 = vadd.f32 %v1807_v46, %v659_v38 }
  0xa7   :  { %v1895_v47 = vpop.f32.mrf.mxu3  ;;  %v1106_v10 = vmax.f32 %v1008_v53, 0.0  ;;  %v1108_v23 = vmax.f32 %v1010_v40, 0.0  ;;  %v1040_v25 = vadd.f32 %v942_v59, %v1893_v14  ;;  %v1925_v26 = vadd.f32 %v1856_v17, %v1762_v6  ;;  %1325 = vst [vmem:[#allocation2 + $0x88] sm:$0xff] %v470_v43 }
  0xa8   :  { %v1897_v11 = vpop.f32.mrf.mxu2  ;;  %v1916_v52 = vadd.f32 %v1895_v47, %v1779_v20  ;;  %v1122_v28 = vmax.f32 %v1024_v44, 0.0  ;;  %v1134_v46 = vmax.f32 %v1036_v48, 0.0  ;;  %v1136_v30 = vmax.f32 %v1038_v4, 0.0 }
  0xa9   :  { %3078 = vst [vmem:[#allocation18_spill] sm:$0xff] %v1897_v11  ;;  %v1906_v62 = vpop.f32.mrf.mxu0  ;;  %v1920_v22 = vadd.f32 %v1897_v11, %v1784_v24  ;;  %v670_v24 = vsub.f32 %v1925_v26, %v1895_v47  ;;  %v674_v38 = vsub.f32 %v1925_v26, %v1897_v11  ;;  %v1934_v59 = vmul.f32 %v1768_v12, %v1887_v39 }
  0xaa   :  { %v387_v51 = vpop.f32.mrf.mxu1  ;;  %3080 = vst [vmem:[#allocation20_spill] sm:$0xff] %v1925_v26  ;;  %v1216_v53 = vadd.f32 %v1122_v28, %v1120_v55  ;;  %v1938_v6 = vsub.f32 %v1916_v52, %v1895_v47  ;;  %v660_v40 = vsub.f32 %v1916_v52, %v1897_v11  ;;  %v1204_v48 = vadd.f32 %v1108_v23, %v1106_v10 }
  0xab   :  { %3079 = vst [vmem:[#allocation19_spill] sm:$0xff] %v1920_v22  ;;  %v471_v35 = vmax.f32 %v387_v51, 0.0  ;;  %v1944_v44 = vsub.f32 %v1920_v22, %v1897_v11  ;;  %v1110_v4 = vmax.f32 %v1012_v1, 0.0  ;;  %v1124_v43 = vmax.f32 %v1026_v45, 0.0 }
  0xac   :  { %3081 = vst [vmem:[#allocation21_spill] sm:$0xff] %v1938_v6  ;;  %v1138_v51 = vmax.f32 %v1040_v25, 0.0  ;;  %v1228_v20 = vadd.f32 %v1136_v30, %v1134_v46  ;;  %v1948_v55 = vsub.f32 %v1925_v26, %v1856_v17  ;;  %v625_v21 = vsel %vm624_vm8, %v1743_v58, %v623_v16 }
  0xad   :  { %3082 = vst [vmem:[#allocation22_spill] sm:$0xff] %v1944_v44  ;;  %v1954_v15 = vadd.f32 %v1828_v50, %v670_v24  ;;  %v1957_v10 = vadd.f32 %v1842_v3, %v674_v38  ;;  %v630_v23 = vmul.f32 %v1904_v41, %v1830_v61  ;;  %v1963_v25 = vadd.f32 %v1216_v53, %v1124_v43 }
  0xae   :  { %1326 = vst [vmem:[#allocation2 + $0xa0] sm:$0xff] %v471_v35  ;;  %v1970_v16 = vadd.f32 %v1839_v2, %v660_v40  ;;  %v1974_v50 = vadd.f32 %v1859_v18, %v1944_v44  ;;  %v3090_v30 = vand.u32 2147483648, %v1743_v58  ;;  %v1984_v2 = vadd.f32 %v1204_v48, %v1110_v4 }
  0xaf   :  { %v275_v34 = vpop.f32.mrf.mxu3  ;;  %3083 = vst [vmem:[#allocation23_spill] sm:$0xff] %v1948_v55  ;;  %v1986_v24 = vadd.f32 %v1228_v20, %v1138_v51  ;;  %v1999_v51 = vmul.f32 %v1819_v56, %v1880_v31  ;;  %v770_v3 = vrot.slane %v1760_v5, 5  ;;  %v776_v18 = vrot.slane %v1766_v9, 5 }
  0xb0   :  { %v467_v28 = vmax.f32 %v275_v34, 0.0  ;;  %v443_v36 = vpop.f32.mrf.mxu2  ;;  %3084 = vst [vmem:[#allocation24_spill] sm:$0xff] %v1954_v15  ;;  %v1967_v34 = vadd.f32 %v1825_v60, %v1938_v6  ;;  %v1981_v35 = vsel %vm626_vm9, %v3090_v30, %v625_v21  ;;  %v631_v60 = vmul.f32 %v1904_v41, %v630_v23 }
  0xb1   :  { %3085 = vst [vmem:[#allocation25_spill] sm:$0xff] %v1957_v10  ;;  %v473_v45 = vmax.f32 %v443_v36, 0.0  ;;  %v1959_v1 = vpop.f32.mrf.mxu0  ;;  %v787_v38 = vrot.slane %v1981_v35, 4  ;;  %v764_v23 = vrot.slane %v1764_v8, 5  ;;  %v2012_v31 = vmul.f32 %v1819_v56, %v1887_v39 }
  0xb2   :  { %3086 = vst [vmem:[#allocation26_spill] sm:$0xff] %v1963_v25  ;;  %v390_v36 = vpop.f32.mrf.mxu1  ;;  %v632_v58 = vmul.f32 0.5, %v631_v60  ;;  %v788_v48 = vrot.slane %v1981_v35, 5  ;;  %v774_v15 = vrot.slane %v1766_v9, 3 }
  0xb3   :  { %3087 = vst [vmem:[#allocation27_spill] sm:$0xff] %v1967_v34  ;;  %v472_v46 = vmax.f32 %v390_v36, 0.0  ;;  %v2004_v36 = vadd.f32 %v1902_v13, %v1882_v32  ;;  %v834_v60 = vperm.slane %v787_v38, 0  ;;  %v946_v13 = vmul.f32 %v1768_v12, %v1900_v42 }
  0xb4   :  { %3088 = vst [vmem:[#allocation28_spill] sm:$0xff] %v1970_v16  ;;  %v947_v38 = vmul.f32 %v1819_v56, %v1900_v42  ;;  %v821_v42 = vperm.slane %v776_v18, 0 }
  0xb5   :  { %3089 = vst [vmem:[#allocation29_spill] sm:$0xff] %v1974_v50  ;;  %1430 = vrsqrt.f32 %v2004_v36  ;;  %v975_v53 = vmul.f32 %v1819_v56, %v834_v60  ;;  %vm612_vm12 = vcmp.eq.f32.partialorder %v2004_v36, inf  ;;  %vm614_vm13 = vcmp.eq.f32.partialorder %v2004_v36, 0.0 }
  0xb6   :  { %1322 = vst [vmem:[#allocation2 + $0x60] sm:$0xff] %v467_v28  ;;  %v835_v28 = vperm.slane %v788_v48, 0 }
  0xb7   :  { %1328 = vst [vmem:[#allocation2 + $0xc0] sm:$0xff] %v473_v45  ;;  %v278_v4 = vpop.f32.mrf.mxu3  ;;  %v633_v45 = vsub.f32 1.5, %v632_v58 }
  0xb8   :  { %3091 = vst [vmem:[#allocation30_spill] sm:$0xff] %v1981_v35  ;;  %v446_v30 = vpop.f32.mrf.mxu2  ;;  %v2085_v19 = vmul.f32 %v1768_v12, %v835_v28 }
  0xb9   :  { %3092 = vst [vmem:[#allocation31_spill] sm:$0xff] %v1984_v2  ;;  %v474_v20 = vmax.f32 %v446_v30, 0.0  ;;  %v2008_v40 = vpop.f32.mrf.mxu0  ;;  %v634_v58 = vmul.f32 %v1904_v41, %v633_v45  ;;  %v639_v41 = vand.u32 2147483648, %v1830_v61  ;;  %v814_v30 = vperm.slane %v770_v3, 0 }
  0xba   :  { %3093 = vst [vmem:[#allocation32_spill] sm:$0xff] %v1986_v24  ;;  %v2016_v32 = vpop.f32.mrf.mxu1  ;;  %v2029_v45 = vadd.f32 %v2008_v40, %v1906_v62  ;;  %v663_v43 = vsub.f32 %v1834_v63, %v2008_v40 }
  0xbb   :  { %1327 = vst [vmem:[#allocation2 + $0xa8] sm:$0xff] %v472_v46  ;;  %v468_v46 = vmax.f32 %v278_v4, 0.0  ;;  %v635_v39 = vmul.f32 %v634_v58, %v1830_v61  ;;  %v807_v4 = vperm.slane %v764_v23, 0  ;;  %v691_v23 = vsub.f32 %v1846_v7, %v2008_v40 }
  0xbc   :  { %3094 = vst [vmem:[#allocation33_spill] sm:$0xff] %v2008_v40  ;;  %v2041_v62 = vsub.f32 %v2029_v45, %v2008_v40  ;;  %v2066_v3 = vmul.f32 %v1819_v56, %v814_v30  ;;  %v2079_v44 = vadd.f32 %v1911_v54, %v663_v43 }
  0xbd   :  { %1323 = vst [vmem:[#allocation2 + $0x68] sm:$0xff] %v468_v46  ;;  %v974_v46 = vmul.f32 %v1768_v12, %v834_v60  ;;  %v637_v58 = vsel %vm636_vm10, %v1830_v61, %v635_v39  ;;  %v2053_v48 = vmul.f32 %v1768_v12, %v807_v4  ;;  %v2056_v39 = vmul.f32 %v1819_v56, %v807_v4 }
  0xbe   :  { %1329 = vst [vmem:[#allocation2 + $0xc8] sm:$0xff] %v474_v20  ;;  %v677_v20 = vsub.f32 %v1811_v49, %v2008_v40  ;;  %v2050_v21 = vsel %vm638_vm11, %v639_v41, %v637_v58  ;;  %v2063_v60 = vmul.f32 %v1768_v12, %v814_v30  ;;  %v2069_v61 = vmul.f32 %v1768_v12, %v821_v42  ;;  %v2074_v58 = vpop.eup %1430 }
  0xbf   :  { %3095 = vst [vmem:[#allocation34_spill] sm:$0xff] %v2029_v45  ;;  %v2046_v18 = vpop.f32.mrf.mxu3  ;;  %v2072_v41 = vmul.f32 %v1819_v56, %v821_v42  ;;  %v2088_v30 = vmul.f32 %v1819_v56, %v835_v28  ;;  %v2090_v24 = vadd.f32 %v946_v13, %v691_v23  ;;  %v2093_v42 = vadd.f32 %v974_v46, %v2041_v62 }
  0xc0   :  { %3096 = vst [vmem:[#allocation35_spill] sm:$0xff] %v2041_v62  ;;  %v2060_v14 = vpop.f32.mrf.mxu2  ;;  %v2082_v6 = vadd.f32 %v1934_v59, %v677_v20  ;;  %v794_v10 = vrot.slane %v2050_v21, 5  ;;  %v606_v13 = vmul.f32 %v2074_v58, %v2004_v36  ;;  %v768_v46 = vrot.slane %v1760_v5, 3 }
  0xc1   :  { %3097 = vst [vmem:[#allocation36_spill] sm:$0xff] %v2050_v21  ;;  %v2076_v4 = vpop.f32.mrf.mxu0  ;;  %v790_v25 = vrot.slane %v2050_v21, 1 }
  0xc2   :  { %3098 = vst [vmem:[#allocation37_spill] sm:$0xff] %v2076_v4  ;;  %v2095_v50 = vpop.f32.mrf.mxu1  ;;  %v2101_v59 = vadd.f32 %v2076_v4, %v1959_v1  ;;  %v664_v43 = vsub.f32 %v1916_v52, %v2076_v4  ;;  %v678_v28 = vsub.f32 %v1925_v26, %v2076_v4  ;;  %v692_v20 = vsub.f32 %v1920_v22, %v2076_v4 }
  0xc3   :  { %3099 = vst [vmem:[#allocation38_spill] sm:$0xff] %v2079_v44  ;;  %v607_v16 = vmul.f32 %v2074_v58, %v606_v13  ;;  %v842_v62 = vperm.slane %v794_v10, 0  ;;  %v762_v10 = vrot.slane %v1764_v8, 3  ;;  %v2189_v5 = vperm.slane %v768_v46, 0 }
  0xc4   :  { %3100 = vst [vmem:[#allocation39_spill] sm:$0xff] %v2082_v6  ;;  %v2118_v54 = vsub.f32 %v2101_v59, %v2076_v4  ;;  %v2129_v1 = vadd.f32 %v1999_v51, %v664_v43  ;;  %v2132_v34 = vadd.f32 %v2012_v31, %v678_v28  ;;  %v2137_v6 = vadd.f32 %v947_v38, %v692_v20 }
  0xc5   :  { %3101 = vst [vmem:[#allocation40_spill] sm:$0xff] %v2090_v24  ;;  %v608_v13 = vmul.f32 0.5, %v607_v16  ;;  %v784_v51 = vrot.slane %v1981_v35, 1  ;;  %v785_v31 = vrot.slane %v1981_v35, 2  ;;  %v786_v43 = vrot.slane %v1981_v35, 3 }
  0xc6   :  { %3102 = vst [vmem:[#allocation41_spill] sm:$0xff] %v2093_v42  ;;  %v2143_v23 = vadd.f32 %v975_v53, %v2118_v54  ;;  %v990_v38 = vmul.f32 %v1768_v12, %v842_v62  ;;  %v2154_v20 = vmul.f32 %v1819_v56, %v842_v62  ;;  %v791_v53 = vrot.slane %v2050_v21, 2 }
  0xc7   :  { %3103 = vst [vmem:[#allocation42_spill] sm:$0xff] %v2101_v59  ;;  %v2135_v2 = vpop.f32.mrf.mxu3  ;;  %v609_v42 = vsub.f32 1.5, %v608_v13  ;;  %v2187_v13 = vperm.slane %v762_v10, 0  ;;  %v2200_v55 = vperm.slane %v785_v31, 0  ;;  %v2208_v10 = vperm.slane %v790_v25, 0 }
  0xc8   :  { %3104 = vst [vmem:[#allocation43_spill] sm:$0xff] %v2118_v54  ;;  %v2148_v28 = vpop.f32.mrf.mxu2  ;;  %v2191_v54 = vperm.slane %v774_v15, 0  ;;  %v3145_v4 = vsub.f32 %v1916_v52, %v1856_v17 }
  0xc9   :  { %3105 = vst [vmem:[#allocation44_spill] sm:$0xff] %v2129_v1  ;;  %v610_v24 = vmul.f32 %v2074_v58, %v609_v42  ;;  %v2205_v42 = vperm.slane %v786_v43, 0 }
  0xca   :  { %3106 = vst [vmem:[#allocation45_spill] sm:$0xff] %v2132_v34  ;;  %v2150_v16 = vpop.f32.mrf.mxu1  ;;  %v2198_v34 = vperm.slane %v784_v51, 0 }
  0xcb   :  { %3107 = vst [vmem:[#allocation46_spill] sm:$0xff] %v2137_v6  ;;  %v2166_v62 = vadd.f32 %v2150_v16, %v2016_v32  ;;  %v665_v8 = vsub.f32 %v1834_v63, %v2150_v16  ;;  %v679_v44 = vsub.f32 %v1811_v49, %v2150_v16  ;;  %v693_v32 = vsub.f32 %v1846_v7, %v2150_v16 }
  0xcc   :  { %3108 = vst [vmem:[#allocation47_spill] sm:$0xff] %v2143_v23  ;;  %v972_v1 = vmul.f32 %v1768_v12, %v2205_v42 }
  0xcd   :  { %3109 = vst [vmem:[#allocation48_spill] sm:$0xff] %v2148_v28  ;;  %v721_v28 = vsub.f32 %v2029_v45, %v2150_v16  ;;  %v2195_v23 = vsub.f32 %v2166_v62, %v2150_v16  ;;  %v2203_v58 = vadd.f32 %v2053_v48, %v665_v8  ;;  %v2216_v6 = vadd.f32 %v2069_v61, %v693_v32 }
  0xce   :  { %3110 = vst [vmem:[#allocation49_spill] sm:$0xff] %v2150_v16  ;;  %v2213_v16 = vadd.f32 %v2063_v60, %v679_v44  ;;  %v2222_v8 = vperm.slane %v791_v53, 0  ;;  %v611_v44 = vmul.f32 %v610_v24, %v2004_v36 }
  0xcf   :  { %3111 = vst [vmem:[#allocation50_spill] sm:$0xff] %v2166_v62  ;;  %v2183_v37 = vpop.f32.mrf.mxu3  ;;  %v2219_v51 = vadd.f32 %v2085_v19, %v721_v28  ;;  %v982_v62 = vmul.f32 %v1768_v12, %v2208_v10 }
  0xd0   :  { %3112 = vst [vmem:[#allocation51_spill] sm:$0xff] %v2183_v37  ;;  %v2226_v48 = vadd.f32 %v2183_v37, %v2046_v18  ;;  %v2235_v61 = vpop.f32.mrf.mxu2  ;;  %v2242_v18 = vadd.f32 %v990_v38, %v2195_v23  ;;  %v3137_v38 = vrot.slane %v2050_v21, 3 }
  0xd1   :  { %3113 = vst [vmem:[#allocation52_spill] sm:$0xff] %v2195_v23  ;;  %v2272_v32 = vadd.f32 %v2235_v61, %v2060_v14 }
  0xd2   :  { %3114 = vst [vmem:[#allocation53_spill] sm:$0xff] %v2203_v58  ;;  %v2210_v15 = vpop.f32.mrf.mxu1  ;;  %v2264_v46 = vsub.f32 %v2226_v48, %v2183_v37 }
  0xd3   :  { %3115 = vst [vmem:[#allocation54_spill] sm:$0xff] %v2210_v15  ;;  %v2230_v25 = vadd.f32 %v2210_v15, %v2095_v50  ;;  %v666_v19 = vsub.f32 %v1916_v52, %v2210_v15  ;;  %v680_v31 = vsub.f32 %v1925_v26, %v2210_v15  ;;  %v694_v24 = vsub.f32 %v1920_v22, %v2210_v15 }
  0xd4   :  { %3116 = vst [vmem:[#allocation55_spill] sm:$0xff] %v2213_v16  ;;  %v722_v43 = vsub.f32 %v2101_v59, %v2210_v15  ;;  %v984_v59 = vmul.f32 %v1768_v12, %v2222_v8 }
  0xd5   :  { %3117 = vst [vmem:[#allocation56_spill] sm:$0xff] %v2216_v6  ;;  %v2252_v28 = vsub.f32 %v2230_v25, %v2210_v15  ;;  %v2279_v50 = vadd.f32 %v2056_v39, %v666_v19  ;;  %v2282_v16 = vadd.f32 %v2066_v3, %v680_v31  ;;  %v2289_v14 = vadd.f32 %v2072_v41, %v694_v24 }
  0xd6   :  { %3118 = vst [vmem:[#allocation57_spill] sm:$0xff] %v2219_v51  ;;  %v2292_v58 = vadd.f32 %v2088_v30, %v722_v43  ;;  %v613_v41 = vsel %vm612_vm12, %v2004_v36, %v611_v44  ;;  %v2310_v31 = vsub.f32 %v2272_v32, %v2235_v61  ;;  %v3138_v3 = vrot.slane %v2050_v21, 4 }
  0xd7   :  { %3119 = vst [vmem:[#allocation58_spill] sm:$0xff] %v2226_v48  ;;  %v2284_v23 = vpop.f32.mrf.mxu3  ;;  %v2296_v60 = vadd.f32 %v2154_v20, %v2252_v28  ;;  %v3134_v20 = vand.u32 2147483648, %v2004_v36  ;;  %v913_v43 = vmul.f32 %v1819_v56, %v1790_v29  ;;  %v917_v30 = vmul.f32 %v1819_v56, %v2187_v13  ;;  %v3140_v29 = vld [vmem:[#allocation9_spill] sm:$0xff] }
  0xd8   :  { %3120 = vst [vmem:[#allocation59_spill] sm:$0xff] %v2230_v25  ;;  %v2315_v24 = vadd.f32 %v2284_v23, %v2135_v2  ;;  %v968_v15 = vmul.f32 %v1768_v12, %v2198_v34 }
  0xd9   :  { %3121 = vst [vmem:[#allocation60_spill] sm:$0xff] %v2235_v61  ;;  %v2328_v2 = vsel %vm614_vm13, %v3134_v20, %v613_v41  ;;  %v2451_v40 = vadd.f32 %v913_v43, %v3145_v4  ;;  %v3150_v4 = vsub.f32 %v1925_v26, %v2284_v23 }
  0xda   :  { %3122 = vst [vmem:[#allocation61_spill] sm:$0xff] %v2242_v18  ;;  %v2350_v19 = vsub.f32 %v2315_v24, %v2284_v23  ;;  %v778_v53 = vrot.slane %v2328_v2, 1  ;;  %v779_v41 = vrot.slane %v2328_v2, 2  ;;  %v780_v39 = vrot.slane %v2328_v2, 3 }
  0xdb   :  { %3123 = vst [vmem:[#allocation62_spill] sm:$0xff] %v2252_v28  ;;  %v781_v20 = vrot.slane %v2328_v2, 4  ;;  %v823_v44 = vperm.slane %v2328_v2, 0  ;;  %v841_v18 = vperm.slane %v3138_v3, 0  ;;  %v916_v28 = vmul.f32 %v1768_v12, %v2187_v13 }
  0xdc   :  { %3124 = vst [vmem:[#allocation63_spill] sm:$0xff] %v2264_v46  ;;  %v826_v36 = vperm.slane %v780_v39, 0  ;;  %v931_v3 = vmul.f32 %v1819_v56, %v2189_v5  ;;  %v3139_v39 = vperm.slane %v1766_v9, 0  ;;  %v945_v13 = vmul.f32 %v1819_v56, %v2191_v54 }
  0xdd   :  { %3125 = vst [vmem:[#allocation64_spill] sm:$0xff] %v2272_v32  ;;  %v827_v51 = vperm.slane %v781_v20, 0  ;;  %v941_v20 = vmul.f32 %v1819_v56, %v3140_v29  ;;  %v953_v6 = vmul.f32 %v1819_v56, %v823_v44  ;;  %v3141_v9 = vperm.slane %v1981_v35, 0 }
  0xde   :  { %3126 = vst [vmem:[#allocation65_spill] sm:$0xff] %v2279_v50  ;;  %v958_v29 = vmul.f32 %v1768_v12, %v826_v36  ;;  %v959_v61 = vmul.f32 %v1819_v56, %v826_v36  ;;  %v970_v36 = vmul.f32 %v1768_v12, %v2200_v55  ;;  %v2474_v43 = vadd.f32 %v931_v3, %v3150_v4 }
  0xdf   :  { %3127 = vst [vmem:[#allocation66_spill] sm:$0xff] %v2282_v16  ;;  %v3142_v32 = vmov %v3141_v9  ;;  %v3155_v4 = vsub.f32 %v2226_v48, %v1821_v57 }
  0xe0   :  { %3128 = vst [vmem:[#allocation67_spill] sm:$0xff] %v2284_v23 }
  0xe1   :  { %3129 = vst [vmem:[#allocation68_spill] sm:$0xff] %v2289_v14  ;;  %v944_v14 = vmul.f32 %v1768_v12, %v2191_v54  ;;  %v961_v54 = vmul.f32 %v1819_v56, %v827_v51 }
  0xe2   :  { %3130 = vst [vmem:[#allocation69_spill] sm:$0xff] %v2292_v58  ;;  %v825_v58 = vperm.slane %v779_v41, 0  ;;  %v939_v41 = vmul.f32 %v1819_v56, %v3139_v39 }
  0xe3   :  { %3131 = vst [vmem:[#allocation70_spill] sm:$0xff] %v2296_v60  ;;  %v840_v60 = vperm.slane %v3137_v38, 0  ;;  %v930_v38 = vmul.f32 %v1768_v12, %v2189_v5 }
  0xe4   :  { %3132 = vst [vmem:[#allocation71_spill] sm:$0xff] %v2310_v31  ;;  %v824_v31 = vperm.slane %v778_v53, 0  ;;  %v927_v53 = vmul.f32 %v1819_v56, %v1788_v27  ;;  %v952_v27 = vmul.f32 %v1768_v12, %v823_v44  ;;  %v956_v50 = vmul.f32 %v1768_v12, %v825_v58 }
  0xe5   :  { %3133 = vst [vmem:[#allocation72_spill] sm:$0xff] %v2315_v24  ;;  %v957_v39 = vmul.f32 %v1819_v56, %v825_v58  ;;  %v966_v44 = vmul.f32 %v1768_v12, %v3141_v9  ;;  %v969_v58 = vmul.f32 %v1819_v56, %v2198_v34  ;;  %v973_v9 = vmul.f32 %v1819_v56, %v2205_v42 }
  0xe6   :  { %3135 = vst [vmem:[#allocation73_spill] sm:$0xff] %v2328_v2  ;;  %v954_v16 = vmul.f32 %v1768_v12, %v824_v31  ;;  %v955_v5 = vmul.f32 %v1819_v56, %v824_v31  ;;  %v960_v2 = vmul.f32 %v1768_v12, %v827_v51  ;;  %v967_v31 = vmul.f32 %v1819_v56, %v3142_v32 }
  0xe7   :  { %3136 = vst [vmem:[#allocation74_spill] sm:$0xff] %v2350_v19  ;;  %v971_v51 = vmul.f32 %v1819_v56, %v2200_v55  ;;  %v3143_v32 = vperm.slane %v2050_v21, 0  ;;  %v983_v55 = vmul.f32 %v1819_v56, %v2208_v10  ;;  %v985_v42 = vmul.f32 %v1819_v56, %v2222_v8 }
  0xe8   :  { %v986_v45 = vmul.f32 %v1768_v12, %v840_v60  ;;  %v988_v21 = vmul.f32 %v1768_v12, %v841_v18  ;;  %v3146_v10 = vsub.f32 %v1834_v63, %v2183_v37  ;;  %v3147_v8 = vsub.f32 %v1916_v52, %v2284_v23 }
  0xe9   :  { %v980_v35 = vmul.f32 %v1768_v12, %v3143_v32  ;;  %v3144_v25 = vmov %v3143_v32  ;;  %v987_v32 = vmul.f32 %v1819_v56, %v840_v60  ;;  %v3148_v60 = vld [vmem:[#allocation23_spill] sm:$0xff]  ;;  %v3168_v12 = vld [vmem:[#allocation34_spill] sm:$0xff] }
  0xea   :  { %v981_v34 = vmul.f32 %v1819_v56, %v3144_v25  ;;  %v989_v25 = vmul.f32 %v1819_v56, %v841_v18  ;;  %v2456_v19 = vadd.f32 %v916_v28, %v3146_v10  ;;  %v2461_v46 = vadd.f32 %v917_v30, %v3147_v8 }
  0xeb   :  { %v2464_v11 = vadd.f32 %v927_v53, %v3148_v60  ;;  %v3149_v18 = vsub.f32 %v1811_v49, %v2183_v37  ;;  %v3151_v28 = vsub.f32 %v1920_v22, %v1895_v47  ;;  %v3152_v30 = vsub.f32 %v1920_v22, %v1856_v17  ;;  %v3162_v49 = vld [vmem:[#allocation63_spill] sm:$0xff] }
  0xec   :  { %v3153_v8 = vsub.f32 %v1846_v7, %v2183_v37  ;;  %v3160_v7 = vld [vmem:[#allocation18_spill] sm:$0xff] }
  0xed   :  { %v2469_v56 = vadd.f32 %v930_v38, %v3149_v18  ;;  %v2479_v10 = vadd.f32 %v939_v41, %v3151_v28  ;;  %v2484_v53 = vadd.f32 %v941_v20, %v3152_v30  ;;  %v3154_v18 = vsub.f32 %v1920_v22, %v2284_v23 }
  0xee   :  { %v2489_v38 = vadd.f32 %v944_v14, %v3153_v8  ;;  %v1050_v41 = vadd.f32 %v952_v27, %v3155_v4  ;;  %v3156_v28 = vsub.f32 %v2315_v24, %v1895_v47  ;;  %v3157_v20 = vsub.f32 %v2226_v48, %v1794_v33 }
  0xef   :  { %v2494_v3 = vadd.f32 %v945_v13, %v3154_v18  ;;  %v3158_v14 = vsub.f32 %v2315_v24, %v1856_v17  ;;  %v3159_v13 = vsub.f32 %v2226_v48, %v1836_v0  ;;  %v3161_v27 = vsub.f32 %v2315_v24, %v3160_v7 }
  0xf0   :  { %v1051_v60 = vadd.f32 %v953_v6, %v3156_v28  ;;  %v1052_v30 = vadd.f32 %v954_v16, %v3157_v20  ;;  %v2519_v6 = vadd.f32 %v958_v29, %v3162_v49  ;;  %v3163_v28 = vld [vmem:[#allocation74_spill] sm:$0xff]  ;;  %v3164_v16 = vld [vmem:[#allocation33_spill] sm:$0xff] }
  0xf1   :  { %v1053_v8 = vadd.f32 %v955_v5, %v3158_v14  ;;  %v2511_v18 = vadd.f32 %v956_v50, %v3159_v13  ;;  %v2516_v4 = vadd.f32 %v957_v39, %v3161_v27  ;;  %v2522_v63 = vadd.f32 %v959_v61, %v3163_v28  ;;  %v3166_v14 = vld [vmem:[#allocation37_spill] sm:$0xff]  ;;  %v3170_v29 = vld [vmem:[#allocation42_spill] sm:$0xff] }
  0xf2   :  { %v3165_v20 = vsub.f32 %v2226_v48, %v3164_v16  ;;  %v3167_v50 = vsub.f32 %v2315_v24, %v3166_v14  ;;  %v3169_v39 = vsub.f32 %v3168_v12, %v1821_v57  ;;  %v3171_v49 = vsub.f32 %v3170_v29, %v1895_v47 }
  0xf3   :  { %v3172_v48 = vsub.f32 %v3168_v12, %v1794_v33 }
  0xf4   :  { %v2527_v5 = vadd.f32 %v960_v2, %v3165_v20  ;;  %v2532_v13 = vadd.f32 %v961_v54, %v3167_v50  ;;  %v2537_v27 = vadd.f32 %v966_v44, %v3169_v39  ;;  %v2542_v61 = vadd.f32 %v967_v31, %v3171_v49 }
  0xf5   :  { %v2547_v2 = vadd.f32 %v968_v15, %v3172_v48  ;;  %v3173_v20 = vsub.f32 %v3170_v29, %v1856_v17  ;;  %v3174_v50 = vsub.f32 %v3168_v12, %v1836_v0  ;;  %v3175_v39 = vsub.f32 %v3170_v29, %v3160_v7 }
  0xf6   :  { %v3176_v31 = vsub.f32 %v3168_v12, %v2183_v37  ;;  %v3177_v48 = vsub.f32 %v3170_v29, %v2284_v23  ;;  %v1150_v12 = vmax.f32 %v1052_v30, 0.0 }
  0xf7   :  { %v2552_v54 = vadd.f32 %v969_v58, %v3173_v20  ;;  %v2557_v44 = vadd.f32 %v970_v36, %v3174_v50  ;;  %v2562_v49 = vadd.f32 %v971_v51, %v3175_v39  ;;  %v3178_v20 = vld [vmem:[#allocation50_spill] sm:$0xff]  ;;  %v3180_v50 = vld [vmem:[#allocation59_spill] sm:$0xff] }
  0xf8   :  { %v2567_v15 = vadd.f32 %v972_v1, %v3176_v31  ;;  %v2572_v58 = vadd.f32 %v973_v9, %v3177_v48  ;;  %v3179_v24 = vsub.f32 %v3178_v20, %v1821_v57  ;;  %v3181_v22 = vsub.f32 %v3180_v50, %v1895_v47 }
  0xf9   :  { %v3182_v51 = vsub.f32 %v3178_v20, %v1794_v33  ;;  %v3183_v1 = vsub.f32 %v3180_v50, %v1856_v17  ;;  %v3184_v9 = vsub.f32 %v3178_v20, %v1836_v0  ;;  %v1166_v30 = vmax.f32 %v2557_v44, 0.0 }
  0xfa   :  { %v1078_v36 = vadd.f32 %v980_v35, %v3179_v24  ;;  %v2580_v26 = vadd.f32 %v981_v34, %v3181_v22  ;;  %v3185_v35 = vsub.f32 %v3180_v50, %v3160_v7  ;;  %v3186_v22 = vsub.f32 %v3178_v20, %v2183_v37 }
  0xfb   :  { %v1080_v39 = vadd.f32 %v982_v62, %v3182_v51  ;;  %v2588_v31 = vadd.f32 %v983_v55, %v3183_v1  ;;  %v1082_v48 = vadd.f32 %v984_v59, %v3184_v9  ;;  %v3187_v62 = vsub.f32 %v3180_v50, %v2284_v23 }
  0xfc   :  { %v2596_v24 = vadd.f32 %v985_v42, %v3185_v35  ;;  %v2601_v34 = vadd.f32 %v986_v45, %v3186_v22  ;;  %v3188_v55 = vsub.f32 %v3178_v20, %v3164_v16  ;;  %v3189_v59 = vsub.f32 %v3180_v50, %v3166_v14 }
  0xfd   :  { %v2606_v51 = vadd.f32 %v987_v32, %v3187_v62  ;;  %v1109_v9 = vmax.f32 %v2451_v40, 0.0  ;;  %v1112_v45 = vmax.f32 %v2456_v19, 0.0  ;;  %v1113_v35 = vmax.f32 %v2461_v46, 0.0 }
  0xfe   :  { %v2611_v1 = vadd.f32 %v988_v21, %v3188_v55  ;;  %v2616_v42 = vadd.f32 %v989_v25, %v3189_v59  ;;  %v1123_v22 = vmax.f32 %v2464_v11, 0.0  ;;  %v1126_v32 = vmax.f32 %v2469_v56, 0.0 }
  0xff   :  { %v1127_v62 = vmax.f32 %v2474_v43, 0.0  ;;  %v1135_v21 = vmax.f32 %v2479_v10, 0.0  ;;  %v1137_v55 = vmax.f32 %v2484_v53, 0.0  ;;  %v1140_v20 = vmax.f32 %v2489_v38, 0.0  ;;  %v3190_v53 = vld [vmem:[#allocation27_spill] sm:$0xff] }
 0x100   :  { %v1141_v25 = vmax.f32 %v2494_v3, 0.0  ;;  %v1148_v59 = vmax.f32 %v1050_v41, 0.0  ;;  %v1149_v40 = vmax.f32 %v1051_v60, 0.0  ;;  %v1151_v19 = vmax.f32 %v1053_v8, 0.0 }
 0x101   :  { %v1152_v46 = vmax.f32 %v2511_v18, 0.0  ;;  %v1153_v11 = vmax.f32 %v2516_v4, 0.0  ;;  %v1154_v56 = vmax.f32 %v2519_v6, 0.0  ;;  %v1155_v43 = vmax.f32 %v2522_v63, 0.0 }
 0x102   :  { %v1162_v38 = vmax.f32 %v2537_v27, 0.0  ;;  %v1163_v3 = vmax.f32 %v2542_v61, 0.0  ;;  %v1164_v60 = vmax.f32 %v2547_v2, 0.0  ;;  %v1165_v41 = vmax.f32 %v2552_v54, 0.0  ;;  %v3192_v54 = vld [vmem:[#allocation24_spill] sm:$0xff] }
 0x103   :  { %v1167_v8 = vmax.f32 %v2562_v49, 0.0  ;;  %v1176_v18 = vmax.f32 %v1078_v36, 0.0  ;;  %v1178_v4 = vmax.f32 %v1080_v39, 0.0  ;;  %v1240_v6 = vadd.f32 %v1150_v12, %v1148_v59 }
 0x104   :  { %v1168_v63 = vmax.f32 %v2567_v15, 0.0  ;;  %v1169_v10 = vmax.f32 %v2572_v58, 0.0  ;;  %v3191_v14 = vmax.f32 %v3190_v53, 0.0  ;;  %v1246_v16 = vadd.f32 %v1151_v19, %v1149_v40 }
 0x105   :  { %v1177_v61 = vmax.f32 %v2580_v26, 0.0  ;;  %v1179_v2 = vmax.f32 %v2588_v31, 0.0  ;;  %v3193_v23 = vmax.f32 %v3192_v54, 0.0  ;;  %v1234_v37 = vadd.f32 %v1137_v55, %v1135_v21  ;;  %v3194_v26 = vld [vmem:[#allocation28_spill] sm:$0xff]  ;;  %v3197_v21 = vld [vmem:[#allocation26_spill] sm:$0xff]  ;;  %v3198_v55 = vld [vmem:[#allocation25_spill] sm:$0xff] }
 0x106   :  { %v1210_v27 = vadd.f32 %v1109_v9, %v3191_v14  ;;  %v1180_v49 = vmax.f32 %v1082_v48, 0.0  ;;  %v1181_v36 = vmax.f32 %v2596_v24, 0.0  ;;  %v1182_v12 = vmax.f32 %v2601_v34, 0.0 }
 0x107   :  { %v1222_v44 = vadd.f32 %v1123_v22, %v3193_v23  ;;  %v1183_v15 = vmax.f32 %v2606_v51, 0.0  ;;  %v1184_v58 = vmax.f32 %v2611_v1, 0.0  ;;  %v1185_v14 = vmax.f32 %v2616_v42, 0.0  ;;  %v3196_v22 = vld [vmem:[#allocation31_spill] sm:$0xff]  ;;  %v3200_v51 = vld [vmem:[#allocation29_spill] sm:$0xff]  ;;  %v3202_v42 = vld [vmem:[#allocation32_spill] sm:$0xff] }
 0x108   :  { %v1241_v39 = vadd.f32 %v1240_v6, %v1152_v46  ;;  %v1264_v9 = vadd.f32 %v1178_v4, %v1176_v18  ;;  %v3195_v59 = vmax.f32 %v3194_v26, 0.0  ;;  %v1247_v40 = vadd.f32 %v1246_v16, %v1153_v11 }
 0x109   :  { %v1252_v19 = vadd.f32 %v1164_v60, %v1162_v38  ;;  %v1258_v23 = vadd.f32 %v1165_v41, %v1163_v3  ;;  %v1206_v48 = vadd.f32 %v3196_v22, %v1112_v45  ;;  %v1218_v24 = vadd.f32 %v3197_v21, %v1126_v32  ;;  %v1434_v45 = vld [vmem:[%s2966_s1] sm:$0x7f]  ;;  %v3203_v60 = vld [vmem:[#allocation38_spill] sm:$0xff] }
 0x10a   :  { %v1211_v31 = vadd.f32 %v1210_v27, %v3195_v59  ;;  %v3199_v34 = vmax.f32 %v3198_v55, 0.0  ;;  %v3201_v54 = vmax.f32 %v3200_v51, 0.0  ;;  %v1230_v46 = vadd.f32 %v3202_v42, %v1140_v20  ;;  %v3209_v59 = vld [vmem:[#allocation45_spill] sm:$0xff]  ;;  %v3217_v51 = vld [vmem:[#allocation48_spill] sm:$0xff] }
 0x10b   :  { %v1265_v18 = vadd.f32 %v1264_v9, %v1180_v49  ;;  %v1270_v4 = vadd.f32 %v1179_v2, %v1177_v61  ;;  %v1242_v16 = vadd.f32 %v1241_v39, %v1154_v56  ;;  %v498_v11 = vrot.slane %v1434_v45, 6  ;;  %v3207_v39 = vld [vmem:[#allocation44_spill] sm:$0xff]  ;;  %v3218_v42 = vld [vmem:[#allocation41_spill] sm:$0xff] }
 0x10c   :  { %v1223_v53 = vadd.f32 %v1222_v44, %v3199_v34  ;;  %v1235_v1 = vadd.f32 %v1234_v37, %v3201_v54  ;;  %v1212_v7 = vadd.f32 %v1211_v31, %v1113_v35  ;;  %v1248_v32 = vadd.f32 %v1247_v40, %v1155_v43  ;;  %v1435_v37 = vld [vmem:[%s2966_s1 + $0x8] sm:$0x7f]  ;;  %s1463_s1 = smov [#allocation2]  }
 0x10d   :  { %v1253_v38 = vadd.f32 %v1252_v19, %v1166_v30  ;;  %v1259_v3 = vadd.f32 %v1258_v23, %v1167_v8  ;;  %v526_v35 = vrot.slane %v1435_v37, 6  ;;  %v3204_v20 = vmax.f32 %v3203_v60, 0.0  ;;  %v2676_v30 = vpop.f32.mrf.mxu2  ;;  %v3211_v19 = vld [vmem:[#allocation40_spill] sm:$0xff]  ;;  %v3226_v60 = vld [vmem:[#allocation54_spill] sm:$0xff]  ;;  %s1348_s14 = sshll.u32 %s1463_s1, 4  ;;  %s1349_s14 = int_to_ptr.vmem [resolvable:$true] %s1348_s14 }
 0x10e   :  { %v1224_v6 = vadd.f32 %v1223_v53, %v1127_v62  ;;  %v1236_v27 = vadd.f32 %v1235_v1, %v1141_v25  ;;  %v3205_v62 = vld [vmem:[#allocation39_spill] sm:$0xff]  ;;  %v1271_v61 = vadd.f32 %v1270_v4, %v1181_v36  ;;  %v505_v2 = vperm.slane %v498_v11, 0 }
 0x10f   :  { %v2670_v41 = vadd.f32 %v1206_v48, %v3204_v20  ;;  %v3206_v25 = vmax.f32 %v3205_v62, 0.0  ;;  %v1254_v44 = vadd.f32 %v1253_v38, %v1168_v63  ;;  %v1260_v49 = vadd.f32 %v1259_v3, %v1169_v10  ;;  %v3213_v48 = vld [vmem:[#allocation46_spill] sm:$0xff]  ;;  %v3223_v11 = vld [vmem:[#allocation19_spill] sm:$0xff]  ;;  %v3224_v38 = vld [vmem:[#allocation49_spill] sm:$0xff] }
 0x110   :  { %v1266_v43 = vadd.f32 %v1265_v18, %v1182_v12  ;;  %v533_v8 = vperm.slane %v526_v35, 0  ;;  %v3208_v9 = vmax.f32 %v3207_v39, 0.0  ;;  %v3210_v31 = vmax.f32 %v3209_v59, 0.0  ;;  %v3225_v3 = vld [vmem:[#allocation58_spill] sm:$0xff]  ;;  %v3227_v20 = vld [vmem:[#allocation72_spill] sm:$0xff] }
 0x111   :  { %v2674_v56 = vadd.f32 %v1218_v24, %v3206_v25  ;;  %v3212_v23 = vmax.f32 %v3211_v19, 0.0  ;;  %v519_v36 = vsub.f32 %v505_v2, %v1434_v45  ;;  %v3214_v63 = vmax.f32 %v3213_v48, 0.0  ;;  %v3228_v2 = vld [vmem:[#allocation6_spill] sm:$0xff] }
 0x112   :  { %v2680_v26 = vadd.f32 %v1212_v7, %v3208_v9  ;;  %v2684_v40 = vadd.f32 %v1224_v6, %v3210_v31  ;;  %v3215_v12 = vmax.f32 %v2527_v5, 0.0  ;;  %v3216_v7 = vmax.f32 %v2532_v13, 0.0  ;;  %v3220_v5 = vld [vmem:[#allocation47_spill] sm:$0xff]  ;;  %v3232_v31 = vld [vmem:[#allocation73_spill] sm:$0xff] }
 0x113   :  { %v2688_v22 = vadd.f32 %v1230_v46, %v3212_v23  ;;  %v2692_v10 = vadd.f32 %v1236_v27, %v3214_v63  ;;  %v547_v55 = vsub.f32 %v533_v8, %v1435_v37  ;;  %v1272_v34 = vadd.f32 %v1271_v61, %v1183_v15  ;;  %v3230_v8 = vld [vmem:[#allocation64_spill] sm:$0xff]  ;;  %v3231_v9 = vld [vmem:[#allocation7_spill] sm:$0xff] }
 0x114   :  { %v2696_v21 = vadd.f32 %v1242_v16, %v3215_v12  ;;  %v2700_v24 = vadd.f32 %v1248_v32, %v3216_v7  ;;  %v2705_v54 = vadd.f32 %v2676_v30, %v3217_v51  ;;  %v554_v1 = vmul.f32 %v519_v36, %v519_v36  ;;  %v3222_v16 = vld [vmem:[#allocation20_spill] sm:$0xff]  ;;  %v3241_v36 = vld [vmem:[#allocation53_spill] sm:$0xff] }
 0x115   :  { %v3219_v46 = vmax.f32 %v3218_v42, 0.0  ;;  %v3221_v4 = vmax.f32 %v3220_v5, 0.0  ;;  %v2715_v13 = vadd.f32 %v1266_v43, %v1184_v58  ;;  %v561_v27 = vmul.f32 %v547_v55, %v547_v55  ;;  %v3234_v55 = vld [vmem:[#allocation30_spill] sm:$0xff]  ;;  %v3235_v51 = vld [vmem:[#allocation36_spill] sm:$0xff] }
 0x116   :  { %v668_v15 = vsub.f32 %v1916_v52, %v2676_v30  ;;  %v682_v45 = vsub.f32 %v3222_v16, %v2676_v30  ;;  %v2733_v25 = vadd.f32 %v1272_v34, %v1185_v14  ;;  %v777_v59 = vrot.slane %v3231_v9, 6  ;;  %v3244_v14 = vld [vmem:[#allocation11_spill] sm:$0xff]  ;;  %v3245_v37 = vld [vmem:[#allocation12_spill] sm:$0xff]  ;;  %v3248_v9 = vld [vmem:[#allocation10_spill] sm:$0xff] }
 0x117   :  { %v2709_v18 = vadd.f32 %v1254_v44, %v3219_v46  ;;  %v2713_v6 = vadd.f32 %v1260_v49, %v3221_v4  ;;  %v2725_v35 = vadd.f32 %v561_v27, %v554_v1  ;;  %v765_v44 = vrot.slane %v3228_v2, 6  ;;  %v3229_v49 = vld [vmem:[#allocation5_spill] sm:$0xff]  ;;  %v3246_v32 = vld [vmem:[#allocation60_spill] sm:$0xff] }
 0x118   :  { %v771_v43 = vrot.slane %v3229_v49, 6  ;;  %v782_v19 = vrot.slane %v3232_v31, 5  ;;  %v783_v48 = vrot.slane %v3232_v31, 6  ;;  %v789_v34 = vrot.slane %v3234_v55, 6  ;;  %v3243_v55 = vld [vmem:[#allocation8_spill] sm:$0xff] }
 0x119   :  { %1432 = vrsqrt.f32 %v2725_v35  ;;  %v795_v1 = vrot.slane %v3235_v51, 6  ;;  %v808_v27 = vperm.slane %v765_v44, 0  ;;  %v822_v53 = vperm.slane %v777_v59, 0 }
 0x11a   :  { %v815_v16 = vperm.slane %v771_v43, 0  ;;  %v828_v7 = vperm.slane %v782_v19, 0  ;;  %v2771_v46 = vsub.f32 %v2705_v54, %v2676_v30  ;;  %v829_v44 = vperm.slane %v783_v48, 0 }
 0x11b   :  { %v651_v4 = vand.u32 2147483648, %v2725_v35  ;;  %v836_v49 = vperm.slane %v789_v34, 0  ;;  %v843_v63 = vperm.slane %v795_v1, 0  ;;  %v3242_v31 = vmax.f32 %v3241_v36, 0.0 }
 0x11c   :  { %3240 = vst [vmem:[#allocation9_spill] sm:$0xff] %v2771_v46  ;;  %v922_v23 = vmul.f32 %v3243_v55, %v808_v27  ;;  %v923_v51 = vmul.f32 %v3244_v14, %v808_v27  ;;  %v936_v39 = vmul.f32 %v3243_v55, %v815_v16  ;;  %vm648_vm14 = vcmp.eq.f32.partialorder %v2725_v35, inf }
 0x11d   :  { %v1208_v59 = vadd.f32 %v2670_v41, %v3242_v31  ;;  %v937_v48 = vmul.f32 %v3244_v14, %v815_v16  ;;  %v950_v61 = vmul.f32 %v3243_v55, %v822_v53  ;;  %v951_v34 = vmul.f32 %v3244_v14, %v822_v53 }
 0x11e   :  { %v962_v36 = vmul.f32 %v3243_v55, %v828_v7  ;;  %vm650_vm15 = vcmp.eq.f32.partialorder %v2725_v35, 0.0  ;;  %v963_v41 = vmul.f32 %v3244_v14, %v828_v7  ;;  %v964_v31 = vmul.f32 %v3243_v55, %v829_v44 }
 0x11f   :  { %v1433_v43 = vpop.eup %1432  ;;  %v965_v27 = vmul.f32 %v3244_v14, %v829_v44  ;;  %v978_v52 = vmul.f32 %v3243_v55, %v836_v49  ;;  %v979_v58 = vmul.f32 %v3244_v14, %v836_v49  ;;  %v992_v16 = vmul.f32 %v3243_v55, %v843_v63  ;;  %v3250_v44 = vld [vmem:[#allocation14_spill] sm:$0xff] }
 0x120   :  { %v642_v19 = vmul.f32 %v1433_v43, %v2725_v35  ;;  %v993_v62 = vmul.f32 %v3244_v14, %v843_v63  ;;  %v1021_v46 = vadd.f32 %v923_v51, %v668_v15  ;;  %v3249_v7 = vsub.f32 %v3248_v9, %v3246_v32  ;;  %v3257_v9 = vld [vmem:[#allocation34_spill] sm:$0xff] }
 0x121   :  { %v1035_v5 = vadd.f32 %v937_v48, %v682_v45  ;;  %v3251_v42 = vsub.f32 %v3250_v44, %v3246_v32  ;;  %v3252_v49 = vsub.f32 %v3223_v11, %v2676_v30  ;;  %v3253_v63 = vsub.f32 %v3225_v3, %v3224_v38 }
 0x122   :  { %v643_v1 = vmul.f32 %v1433_v43, %v642_v19  ;;  %v3247_v19 = vsub.f32 %v3245_v37, %v3246_v32  ;;  %v1034_v2 = vadd.f32 %v936_v39, %v3249_v7  ;;  %v3254_v15 = vsub.f32 %v3227_v20, %v3226_v60 }
 0x123   :  { %v1048_v12 = vadd.f32 %v950_v61, %v3251_v42  ;;  %v1049_v0 = vadd.f32 %v951_v34, %v3252_v49  ;;  %v3255_v45 = vsub.f32 %v3225_v3, %v3246_v32  ;;  %v3256_v61 = vsub.f32 %v3227_v20, %v2676_v30 }
 0x124   :  { %v644_v53 = vmul.f32 0.5, %v643_v1  ;;  %v1020_v28 = vadd.f32 %v922_v23, %v3247_v19  ;;  %v1060_v1 = vadd.f32 %v962_v36, %v3253_v63  ;;  %v1061_v23 = vadd.f32 %v963_v41, %v3254_v15  ;;  %v3260_v36 = vld [vmem:[#allocation50_spill] sm:$0xff] }
 0x125   :  { %v1062_v39 = vadd.f32 %v964_v31, %v3255_v45  ;;  %v1063_v42 = vadd.f32 %v965_v27, %v3256_v61  ;;  %v3258_v11 = vsub.f32 %v3257_v9, %v3246_v32  ;;  %v3259_v48 = vsub.f32 %v3170_v29, %v2676_v30  ;;  %v3271_v9 = vld [vmem:[#allocation68_spill] sm:$0xff] }
 0x126   :  { %v645_v37 = vsub.f32 1.5, %v644_v53  ;;  %v3261_v41 = vsub.f32 %v3260_v36, %v3246_v32  ;;  %v3262_v3 = vsub.f32 %v3180_v50, %v2676_v30  ;;  %v1118_v27 = vmax.f32 %v1020_v28, 0.0  ;;  %v3263_v30 = vld [vmem:[#allocation65_spill] sm:$0xff] }
 0x127   :  { %v2821_v51 = vadd.f32 %v978_v52, %v3258_v11  ;;  %v2826_v34 = vadd.f32 %v979_v58, %v3259_v48  ;;  %v1119_v19 = vmax.f32 %v1021_v46, 0.0  ;;  %v1132_v52 = vmax.f32 %v1034_v2, 0.0 }
 0x128   :  { %v2831_v53 = vadd.f32 %v992_v16, %v3261_v41  ;;  %v2836_v20 = vadd.f32 %v993_v62, %v3262_v3  ;;  %v646_v31 = vmul.f32 %v1433_v43, %v645_v37  ;;  %v1133_v7 = vmax.f32 %v1035_v5, 0.0  ;;  %v3265_v5 = vld [vmem:[#allocation55_spill] sm:$0xff]  ;;  %v3267_v37 = vld [vmem:[#allocation66_spill] sm:$0xff] }
 0x129   :  { %v1146_v44 = vmax.f32 %v1048_v12, 0.0  ;;  %v1147_v49 = vmax.f32 %v1049_v0, 0.0  ;;  %v1158_v29 = vmax.f32 %v1060_v1, 0.0  ;;  %v1159_v63 = vmax.f32 %v1061_v23, 0.0 }
 0x12a   :  { %v647_v58 = vmul.f32 %v646_v31, %v2725_v35  ;;  %v1160_v15 = vmax.f32 %v1062_v39, 0.0  ;;  %v1161_v32 = vmax.f32 %v1063_v42, 0.0  ;;  %v1174_v16 = vmax.f32 %v2821_v51, 0.0 }
 0x12b   :  { %v1175_v45 = vmax.f32 %v2826_v34, 0.0  ;;  %v1188_v50 = vmax.f32 %v2831_v53, 0.0  ;;  %v3264_v62 = vmax.f32 %v3263_v30, 0.0  ;;  %v1189_v12 = vmax.f32 %v2836_v20, 0.0  ;;  %v3318_v53 = vld [vmem:[#allocation35_spill] sm:$0xff] }
 0x12c   :  { %v649_v0 = vsel %vm648_vm14, %v2725_v35, %v647_v58  ;;  %v2849_v46 = vadd.f32 %v1208_v59, %v1118_v27  ;;  %v3266_v2 = vmax.f32 %v3265_v5, 0.0  ;;  %v3268_v23 = vmax.f32 %v3267_v37, 0.0  ;;  %v3273_v37 = vld [vmem:[#allocation57_spill] sm:$0xff] }
 0x12d   :  { %v1214_v28 = vadd.f32 %v2680_v26, %v3264_v62  ;;  %v652_v1 = vsel %vm650_vm15, %v651_v4, %v649_v0  ;;  %v3269_v26 = vld [vmem:[#allocation56_spill] sm:$0xff]  ;;  %v3272_v11 = vmax.f32 %v3271_v9, 0.0  ;;  %v1250_v58 = vadd.f32 %v2700_v24, %v1159_v63 }
 0x12e   :  { %v1220_v43 = vadd.f32 %v2674_v56, %v3266_v2  ;;  %v1226_v39 = vadd.f32 %v2684_v40, %v3268_v23  ;;  %v3270_v61 = vmax.f32 %v3269_v26, 0.0  ;;  %v796_v51 = vrot.slane %v652_v1, 1 }
 0x12f   :  { %v1238_v59 = vadd.f32 %v2692_v10, %v3272_v11  ;;  %v797_v48 = vrot.slane %v652_v1, 2  ;;  %v798_v36 = vrot.slane %v652_v1, 3  ;;  %v1244_v56 = vadd.f32 %v2696_v21, %v1158_v29 }
 0x130   :  { %v1232_v42 = vadd.f32 %v2688_v22, %v3270_v61  ;;  %v799_v41 = vrot.slane %v652_v1, 4  ;;  %v800_v35 = vrot.slane %v652_v1, 5  ;;  %v844_v4 = vperm.slane %v652_v1, 0 }
 0x131   :  { %v1215_v3 = vadd.f32 %v1214_v28, %v1119_v19  ;;  %v845_v31 = vperm.slane %v796_v51, 0  ;;  %v846_v27 = vperm.slane %v797_v48, 0  ;;  %v1221_v40 = vadd.f32 %v1220_v43, %v1132_v52 }
 0x132   :  { %v994_v22 = vmul.f32 %v3243_v55, %v844_v4  ;;  %v1227_v30 = vadd.f32 %v1226_v39, %v1133_v7  ;;  %v1233_v62 = vadd.f32 %v1232_v42, %v1146_v44  ;;  %v1239_v0 = vadd.f32 %v1238_v59, %v1147_v49  ;;  %v3275_v44 = vld [vmem:[#allocation69_spill] sm:$0xff] }
 0x133   :  { %v801_v10 = vrot.slane %v652_v1, 6  ;;  %v847_v5 = vperm.slane %v798_v36, 0  ;;  %v996_v2 = vmul.f32 %v3243_v55, %v845_v31  ;;  %v3274_v21 = vmax.f32 %v3273_v37, 0.0  ;;  %v3281_v59 = vld [vmem:[#allocation61_spill] sm:$0xff] }
 0x134   :  { %v848_v23 = vperm.slane %v799_v41, 0  ;;  %v849_v19 = vperm.slane %v800_v35, 0  ;;  %v995_v28 = vmul.f32 %v3244_v14, %v844_v4  ;;  %v997_v52 = vmul.f32 %v3244_v14, %v845_v31  ;;  %v3285_v35 = vld [vmem:[#allocation13_spill] sm:$0xff] }
 0x135   :  { %v1256_v29 = vadd.f32 %v2709_v18, %v3274_v21  ;;  %v998_v24 = vmul.f32 %v3243_v55, %v846_v27  ;;  %v1245_v63 = vadd.f32 %v1244_v56, %v1160_v15  ;;  %v1251_v7 = vadd.f32 %v1250_v58, %v1161_v32 }
 0x136   :  { %v3276_v49 = vmax.f32 %v3275_v44, 0.0  ;;  %v3277_v1 = vsub.f32 %v3230_v8, %v1821_v57  ;;  %v3278_v18 = vsub.f32 %v2705_v54, %v1895_v47  ;;  %v3279_v61 = vsub.f32 %v3230_v8, %v1794_v33  ;;  %v3283_v33 = vld [vmem:[#allocation70_spill] sm:$0xff] }
 0x137   :  { %v3280_v15 = vsub.f32 %v2705_v54, %v1856_v17  ;;  %v850_v9 = vperm.slane %v801_v10, 0  ;;  %v999_v11 = vmul.f32 %v3244_v14, %v846_v27  ;;  %v3282_v57 = vmax.f32 %v3281_v59, 0.0  ;;  %v3287_v27 = vld [vmem:[#allocation18_spill] sm:$0xff] }
 0x138   :  { %v1262_v43 = vadd.f32 %v2713_v6, %v3276_v49  ;;  %v1092_v39 = vadd.f32 %v994_v22, %v3277_v1  ;;  %v1093_v26 = vadd.f32 %v995_v28, %v3278_v18  ;;  %v1094_v42 = vadd.f32 %v996_v2, %v3279_v61  ;;  %v3293_v1 = vld [vmem:[#allocation33_spill] sm:$0xff] }
 0x139   :  { %v1095_v32 = vadd.f32 %v997_v52, %v3280_v15  ;;  %v1000_v6 = vmul.f32 %v3243_v55, %v847_v5  ;;  %v1268_v51 = vadd.f32 %v2715_v13, %v3282_v57  ;;  %v1002_v47 = vmul.f32 %v3243_v55, %v848_v23  ;;  %v3295_v18 = vld [vmem:[#allocation37_spill] sm:$0xff] }
 0x13a   :  { %v1004_v48 = vmul.f32 %v3243_v55, %v849_v19  ;;  %v1257_v36 = vadd.f32 %v1256_v29, %v1174_v16  ;;  %v3284_v56 = vmax.f32 %v3283_v33, 0.0  ;;  %v1001_v17 = vmul.f32 %v3244_v14, %v847_v5  ;;  %v3289_v29 = vld [vmem:[#allocation51_spill] sm:$0xff] }
 0x13b   :  { %v3286_v4 = vsub.f32 %v3230_v8, %v3285_v35  ;;  %v3288_v58 = vsub.f32 %v2705_v54, %v3287_v27  ;;  %v1190_v13 = vmax.f32 %v1092_v39, 0.0  ;;  %v1003_v10 = vmul.f32 %v3244_v14, %v848_v23 }
 0x13c   :  { %v1274_v41 = vadd.f32 %v2733_v25, %v3284_v56  ;;  %v1191_v2 = vmax.f32 %v1093_v26, 0.0  ;;  %v1192_v37 = vmax.f32 %v1094_v42, 0.0  ;;  %v1193_v16 = vmax.f32 %v1095_v32, 0.0 }
 0x13d   :  { %v1096_v31 = vadd.f32 %v998_v24, %v3286_v4  ;;  %v1097_v22 = vadd.f32 %v999_v11, %v3288_v58  ;;  %v1005_v21 = vmul.f32 %v3244_v14, %v849_v19  ;;  %v1006_v25 = vmul.f32 %v3243_v55, %v850_v9  ;;  %v3291_v24 = vld [vmem:[#allocation67_spill] sm:$0xff]  ;;  %v3308_v58 = vld [vmem:[#allocation9_spill] sm:$0xff] }
 0x13e   :  { %v1007_v5 = vmul.f32 %v3244_v14, %v850_v9  ;;  %v3290_v28 = vsub.f32 %v3230_v8, %v3289_v29  ;;  %v3292_v44 = vsub.f32 %v2705_v54, %v3291_v24  ;;  %v3294_v23 = vsub.f32 %v3230_v8, %v3293_v1 }
 0x13f   :  { %v3296_v26 = vsub.f32 %v2705_v54, %v3295_v18  ;;  %v3297_v55 = vsub.f32 %v3230_v8, %v3224_v38  ;;  %v3298_v61 = vsub.f32 %v2705_v54, %v3226_v60  ;;  %v1194_v15 = vmax.f32 %v1096_v31, 0.0  ;;  %v3305_v38 = vld [vmem:[#allocation71_spill] sm:$0xff] }
 0x140   :  { %v1098_v52 = vadd.f32 %v1000_v6, %v3290_v28  ;;  %v1099_v49 = vadd.f32 %v1001_v17, %v3292_v44  ;;  %v1100_v39 = vadd.f32 %v1002_v47, %v3294_v23  ;;  %v1195_v32 = vmax.f32 %v1097_v22, 0.0  ;;  %v3299_v6 = vld [vmem:[#allocation16_spill] sm:$0xff]  ;;  %v3301_v47 = vld [vmem:[#allocation21_spill] sm:$0xff]  ;;  %v3303_v17 = vld [vmem:[#allocation15_spill] sm:$0xff] }
 0x141   :  { %v1101_v19 = vadd.f32 %v1003_v10, %v3296_v26  ;;  %v1102_v14 = vadd.f32 %v1004_v48, %v3297_v55  ;;  %v1103_v42 = vadd.f32 %v1005_v21, %v3298_v61  ;;  %v1276_v9 = vadd.f32 %v1192_v37, %v1190_v13  ;;  %v3306_v54 = vld [vmem:[#allocation23_spill] sm:$0xff]  ;;  %v3311_v21 = vld [vmem:[#allocation22_spill] sm:$0xff] }
 0x142   :  { %v1282_v11 = vadd.f32 %v1193_v16, %v1191_v2  ;;  %v3300_v59 = vmax.f32 %v3299_v6, 0.0  ;;  %v3302_v33 = vmax.f32 %v3301_v47, 0.0  ;;  %v3304_v35 = vmax.f32 %v3303_v17, 0.0  ;;  %v3309_v2 = vld [vmem:[#allocation17_spill] sm:$0xff]  ;;  %v3320_v26 = vld [vmem:[#allocation62_spill] sm:$0xff] }
 0x143   :  { %v1104_v8 = vadd.f32 %v1006_v25, %v3305_v38  ;;  %v1196_v48 = vmax.f32 %v1098_v52, 0.0  ;;  %v1277_v27 = vadd.f32 %v1276_v9, %v1194_v15  ;;  %v3307_v60 = vmax.f32 %v3306_v54, 0.0  ;;  %v3313_v52 = vld [vmem:[#allocation63_spill] sm:$0xff] }
 0x144   :  { %v1302_v57 = vsub.f32 %v2849_v46, %v3300_v59  ;;  %v1303_v56 = vsub.f32 %v1215_v3, %v3302_v33  ;;  %v1304_v4 = vsub.f32 %v1221_v40, %v3304_v35  ;;  %v1105_v22 = vadd.f32 %v1007_v5, %v3308_v58 }
 0x145   :  { %v1305_v31 = vsub.f32 %v1227_v30, %v3307_v60  ;;  %v1197_v13 = vmax.f32 %v1099_v49, 0.0  ;;  %v1283_v10 = vadd.f32 %v1282_v11, %v1195_v32  ;;  %v3310_v37 = vmax.f32 %v3309_v2, 0.0 }
 0x146   :  { %1330 = vst [vmem:[#allocation2 + $0x10] sm:$0xff] %v1302_v57  ;;  %v1198_v16 = vmax.f32 %v1100_v39, 0.0  ;;  %v1263_v3 = vadd.f32 %v1262_v43, %v1175_v45  ;;  %v1278_v40 = vadd.f32 %v1277_v27, %v1196_v48  ;;  %v3312_v25 = vmax.f32 %v3311_v21, 0.0  ;;  %v3315_v45 = vld [vmem:[#allocation74_spill] sm:$0xff] }
 0x147   :  { %v1306_v46 = vsub.f32 %v1233_v62, %v3310_v37  ;;  %1331 = vst [vmem:[#allocation2 + $0x18] sm:$0xff] %v1303_v56  ;;  %v1199_v28 = vmax.f32 %v1101_v19, 0.0  ;;  %v1269_v30 = vadd.f32 %v1268_v51, %v1188_v50  ;;  %v1284_v5 = vadd.f32 %v1283_v10, %v1197_v13 }
 0x148   :  { %v1307_v29 = vsub.f32 %v1239_v0, %v3312_v25  ;;  %v3314_v24 = vmax.f32 %v3313_v52, 0.0  ;;  %1332 = vst [vmem:[#allocation2 + $0x30] sm:$0xff] %v1304_v4  ;;  %v1200_v62 = vmax.f32 %v1102_v14, 0.0  ;;  %v1275_v49 = vadd.f32 %v1274_v41, %v1189_v12  ;;  %v3317_v0 = vld [vmem:[#allocation52_spill] sm:$0xff]  ;;  %v3321_v14 = vld [vmem:[#allocation43_spill] sm:$0xff] }
 0x149   :  { %v1279_v34 = vadd.f32 %v1278_v40, %v1198_v16  ;;  %v3316_v43 = vmax.f32 %v3315_v45, 0.0  ;;  %1333 = vst [vmem:[#allocation2 + $0x38] sm:$0xff] %v1305_v31  ;;  %v1298_v23 = vmax.f32 %v3317_v0, 0.0  ;;  %v1201_v39 = vmax.f32 %v1103_v42, 0.0 }
 0x14a   :  { %v1308_v44 = vsub.f32 %v1245_v63, %v3314_v24  ;;  %v1285_v18 = vadd.f32 %v1284_v5, %v1199_v28  ;;  %v3319_v50 = vmax.f32 %v3318_v53, 0.0  ;;  %1334 = vst [vmem:[#allocation2 + $0x50] sm:$0xff] %v1306_v46  ;;  %v1299_v63 = vmax.f32 %v3320_v26, 0.0 }
 0x14b   :  { %v1309_v1 = vsub.f32 %v1251_v7, %v3316_v43  ;;  %v1202_v19 = vmax.f32 %v1104_v8, 0.0  ;;  %v1280_v55 = vadd.f32 %v1279_v34, %v1200_v62  ;;  %v3322_v20 = vmax.f32 %v3321_v14, 0.0  ;;  %1335 = vst [vmem:[#allocation2 + $0x58] sm:$0xff] %v1307_v29 }
 0x14c   :  { %v1310_v51 = vsub.f32 %v1257_v36, %v3319_v50  ;;  %v1203_v41 = vmax.f32 %v1105_v22, 0.0  ;;  %v1286_v61 = vadd.f32 %v1285_v18, %v1201_v39  ;;  %v1312_v7 = vsub.f32 %v1269_v30, %v1298_v23  ;;  %1336 = vst [vmem:[#allocation2 + $0x70] sm:$0xff] %v1308_v44 }
 0x14d   :  { %v1311_v12 = vsub.f32 %v1263_v3, %v3322_v20  ;;  %v1300_v15 = vmax.f32 %v3305_v38, 0.0  ;;  %v1281_v42 = vadd.f32 %v1280_v55, %v1202_v19  ;;  %v1313_v32 = vsub.f32 %v1275_v49, %v1299_v63  ;;  %1337 = vst [vmem:[#allocation2 + $0x78] sm:$0xff] %v1309_v1 }
 0x14e   :  { %v1287_v36 = vadd.f32 %v1286_v61, %v1203_v41  ;;  %v1301_v9 = vmax.f32 %v3308_v58, 0.0  ;;  %1338 = vst [vmem:[#allocation2 + $0x90] sm:$0xff] %v1310_v51 }
 0x14f   :  { %v1314_v11 = vsub.f32 %v1281_v42, %v1300_v15  ;;  %1339 = vst [vmem:[#allocation2 + $0x98] sm:$0xff] %v1311_v12 }
 0x150   :  { %v1315_v6 = vsub.f32 %v1287_v36, %v1301_v9  ;;  %1340 = vst [vmem:[#allocation2 + $0xb0] sm:$0xff] %v1312_v7 }
 0x151   :  { %1341 = vst [vmem:[#allocation2 + $0xb8] sm:$0xff] %v1313_v32 }
 0x152   :  { %1342 = vst [vmem:[#allocation2 + $0xd0] sm:$0xff] %v1314_v11 }
 0x153   :  { %1343 = vst [vmem:[#allocation2 + $0xd8] sm:$0xff] %v1315_v6 }
 0x154   :  { %1356 = dma.vmem_to_hbm [thread:$0]  %s1349_s14, 3584, %s1351_s17, [#allocation3], %s1464_s18, %s1464_s18, %s1465_s19  }
 0x155   :  { %1460 = dma.done.wait [#allocation3], 3584  }
 0x156   :  { %1461 = vsyncadd [#allocation3], 4294963712 }
 0x157   :  { %1361 = vsyncpa [#allocation3], 1 }

</bundles_post_ra>
